<compile_context>
chip_gen: v7x
topology: tpu7x:2x2x1
jax: 0.10.0
libtpu: 0.0.40
codegen_flags: <defaults>
</compile_context>

<pallas_src>
import functools
import math

import jax
import jax.numpy as jnp
from jax import lax
from jax.experimental import pallas as pl
from jax.experimental.pallas import tpu as pltpu


def _round_up(x, m):
    return ((x + m - 1) // m) * m


def _flash_attn_v1_kernel(xq_ref, xkv_ref, wq_ref, wk_ref, wv_ref, o_ref,
                          q_scr, m_scr, l_scr, acc_scr,
                          *, scale, seq_len, kv_tile, needs_mask):
    """One (q_tile, kv_tile) step of online-softmax attention.

    xq_ref:  [TQ, D_in_p]   input rows for this Q tile
    xkv_ref: [TK, D_in_p]   input rows for this KV tile
    w*_ref:  [D_in_p, D_out_p]
    o_ref:   [TQ, D_out_p]
    """
    ki = pl.program_id(1)

    @pl.when(ki == 0)
    def _init():
        # Project Q once per Q tile; fold the softmax scale into Q here.
        q = jnp.dot(xq_ref[...], wq_ref[...], preferred_element_type=jnp.float32)
        q_scr[...] = q * scale
        m_scr[...] = jnp.full_like(m_scr, -jnp.inf)
        l_scr[...] = jnp.zeros_like(l_scr)
        acc_scr[...] = jnp.zeros_like(acc_scr)

    # Per-KV-tile K / V projections (MXU, f32 accumulate).
    k = jnp.dot(xkv_ref[...], wk_ref[...], preferred_element_type=jnp.float32)
    v = jnp.dot(xkv_ref[...], wv_ref[...], preferred_element_type=jnp.float32)

    # scores = q @ k^T as a contraction over the last dims (no explicit transpose / XLU copy).
    s = lax.dot_general(q_scr[...], k, (((1,), (1,)), ((), ())),
                        preferred_element_type=jnp.float32)          # [TQ, TK]

    if needs_mask:  # static: only emitted when S was padded
        kv_idx = ki * kv_tile + lax.broadcasted_iota(jnp.int32, s.shape, 1)
        s = jnp.where(kv_idx < seq_len, s, -1e30)

    # Online softmax update.
    m_prev = m_scr[...]
    m_new = jnp.maximum(m_prev, jnp.max(s, axis=-1, keepdims=True))
    alpha = jnp.exp(m_prev - m_new)
    p = jnp.exp(s - m_new)
    l_scr[...] = alpha * l_scr[...] + jnp.sum(p, axis=-1, keepdims=True)
    acc_scr[...] = alpha * acc_scr[...] + jnp.dot(p, v, preferred_element_type=jnp.float32)
    m_scr[...] = m_new

    @pl.when(ki == pl.num_programs(1) - 1)
    def _finalize():
        l = l_scr[...]
        inv_l = pl.reciprocal(l, approx=True)      # EUP slot (nearly free)
        inv_l = inv_l * (2.0 - l * inv_l)          # one Newton step -> f32-exact normalization
        o_ref[...] = (acc_scr[...] * inv_l).astype(o_ref.dtype)


def attention_v1(inputs, w_query, w_key, w_value, *, max_tile=256):
    """inputs: [S, D_in]; w_*: [D_in, D_out] -> [S, D_out] context vectors."""
    seq, d_in = inputs.shape
    d_out = w_query.shape[1]

    # Lane-dense padding: projection dims -> multiples of 128, seq -> multiple of the tile.
    d_in_p = _round_up(d_in, 128)
    d_out_p = _round_up(d_out, 128)
    tile = min(max_tile, _round_up(seq, 128))
    s_pad = _round_up(seq, tile)
    n_q = s_pad // tile
    n_kv = s_pad // tile

    x_p = jnp.zeros((s_pad, d_in_p), inputs.dtype).at[:seq, :d_in].set(inputs)
    wq_p = jnp.zeros((d_in_p, d_out_p), w_query.dtype).at[:d_in, :d_out].set(w_query)
    wk_p = jnp.zeros((d_in_p, d_out_p), w_key.dtype).at[:d_in, :d_out].set(w_key)
    wv_p = jnp.zeros((d_in_p, d_out_p), w_value.dtype).at[:d_in, :d_out].set(w_value)

    kernel = functools.partial(
        _flash_attn_v1_kernel,
        scale=1.0 / math.sqrt(d_out),      # logical d_out (not the padded block dim)
        seq_len=seq,
        kv_tile=tile,
        needs_mask=(s_pad != seq),
    )

    cost = pl.CostEstimate(
        flops=2 * seq * d_in * d_out * 3 + 4 * seq * seq * d_out,
        transcendentals=seq * seq,
        bytes_accessed=4 * (seq * d_in + 3 * d_in * d_out + seq * d_out),
    )

    out_p = pl.pallas_call(
        kernel,
        out_shape=jax.ShapeDtypeStruct((s_pad, d_out_p), inputs.dtype),
        grid_spec=pltpu.PrefetchScalarGridSpec(
            num_scalar_prefetch=0,
            grid=(n_q, n_kv),                                            # KV (reduction) axis last
            in_specs=[
                pl.BlockSpec((tile, d_in_p), lambda qi, ki: (qi, 0)),    # x rows for Q tile
                pl.BlockSpec((tile, d_in_p), lambda qi, ki: (ki, 0)),    # x rows for KV tile
                pl.BlockSpec((d_in_p, d_out_p), lambda qi, ki: (0, 0)),  # W_query
                pl.BlockSpec((d_in_p, d_out_p), lambda qi, ki: (0, 0)),  # W_key
                pl.BlockSpec((d_in_p, d_out_p), lambda qi, ki: (0, 0)),  # W_value
            ],
            out_specs=pl.BlockSpec((tile, d_out_p), lambda qi, ki: (qi, 0)),
            scratch_shapes=[
                pltpu.VMEM((tile, d_out_p), jnp.float32),   # scaled Q tile
                pltpu.VMEM((tile, 1), jnp.float32),         # running max m
                pltpu.VMEM((tile, 1), jnp.float32),         # running denom l
                pltpu.VMEM((tile, d_out_p), jnp.float32),   # output accumulator
            ],
        ),
        compiler_params=pltpu.CompilerParams(
            dimension_semantics=("parallel", "arbitrary"),
            vmem_limit_bytes=48 * 1024 * 1024,
        ),
        cost_estimate=cost,
    )(x_p, x_p, wq_p, wk_p, wv_p)

    return out_p[:seq, :d_out]


def attention_v1_ref(inputs, w_query, w_key, w_value):
    """Pure-JAX reference implementing the PyTorch forward exactly."""
    keys = inputs @ w_key
    query = inputs @ w_query
    value = inputs @ w_value
    scores = query @ keys.T
    scaled = scores / math.sqrt(w_query.shape[1])
    weights = jax.nn.softmax(scaled, axis=-1)
    return weights @ value


if __name__ == "__main__":
    dimension_in = 3
    dimension_out = 2

    # Same inputs as the PyTorch script.
    inputs = jnp.array(
        [[0.43, 0.15, 0.89],
         [0.55, 0.87, 0.66],
         [0.57, 0.85, 0.64],
         [0.22, 0.58, 0.33],
         [0.77, 0.25, 0.10],
         [0.05, 0.80, 0.55]],
        dtype=jnp.float32,
    )

    # Deterministic parameter init (equivalent of torch.rand: uniform [0, 1)).
    key = jax.random.PRNGKey(0)
    kq, kk, kv = jax.random.split(key, 3)
    w_query = jax.random.uniform(kq, (dimension_in, dimension_out), dtype=jnp.float32)
    w_key = jax.random.uniform(kk, (dimension_in, dimension_out), dtype=jnp.float32)
    w_value = jax.random.uniform(kv, (dimension_in, dimension_out), dtype=jnp.float32)

    out = attention_v1(inputs, w_query, w_key, w_value)
    out = jax.block_until_ready(out)

    ref = attention_v1_ref(inputs, w_query, w_key, w_value)
    assert out.shape == (inputs.shape[0], dimension_out)
    assert jnp.allclose(out, ref, atol=2e-5, rtol=2e-5), (out, ref)

    print("KERNEL_OK")
</pallas_src>

<mosaic_0001>
module attributes {stable_mosaic.version = 11 : i64} {
  func.func @_flash_attn_v1_kernel(%arg0: i32, %arg1: i32, %arg2: memref<128x128xf32, #tpu.memory_space<vmem>>, %arg3: memref<128x128xf32, #tpu.memory_space<vmem>>, %arg4: memref<128x128xf32, #tpu.memory_space<vmem>>, %arg5: memref<128x128xf32, #tpu.memory_space<vmem>>, %arg6: memref<128x128xf32, #tpu.memory_space<vmem>>, %arg7: memref<128x128xf32, #tpu.memory_space<vmem>>, %arg8: memref<128x128xf32, #tpu.memory_space<vmem>>, %arg9: memref<128x1xf32, #tpu.memory_space<vmem>>, %arg10: memref<128x1xf32, #tpu.memory_space<vmem>>, %arg11: memref<128x128xf32, #tpu.memory_space<vmem>>) attributes {dimension_semantics = [#tpu.dimension_semantics<parallel>, #tpu.dimension_semantics<arbitrary>], iteration_bounds = array<i64: 1, 1>, scalar_prefetch = 0 : i64, scratch_operands = 4 : i64, tpu.core_type = #tpu.core_type<tc>, window_params = [{transform_indices = @transform_0, window_bounds = array<i64: 128, 128>}, {transform_indices = @transform_1, window_bounds = array<i64: 128, 128>}, {pipeline_mode = #tpu.pipeline_mode<synchronous>, transform_indices = @transform_2, window_bounds = array<i64: 128, 128>}, {pipeline_mode = #tpu.pipeline_mode<synchronous>, transform_indices = @transform_3, window_bounds = array<i64: 128, 128>}, {pipeline_mode = #tpu.pipeline_mode<synchronous>, transform_indices = @transform_4, window_bounds = array<i64: 128, 128>}, {transform_indices = @transform_5, window_bounds = array<i64: 128, 128>}]} {
    %c0_i32 = arith.constant 0 : i32
    %0 = arith.cmpi eq, %arg1, %c0_i32 : i32
    %1 = arith.extui %0 : i1 to i32
    %c0_i32_0 = arith.constant 0 : i32
    %2 = arith.cmpi ne, %1, %c0_i32_0 : i32
    scf.if %2 {
      %c0_30 = arith.constant 0 : index
      %c0_31 = arith.constant 0 : index
      %44 = vector.load %arg2[%c0_30, %c0_31] : memref<128x128xf32, #tpu.memory_space<vmem>>, vector<128x128xf32>
      %c0_32 = arith.constant 0 : index
      %c0_33 = arith.constant 0 : index
      %45 = vector.load %arg4[%c0_32, %c0_33] : memref<128x128xf32, #tpu.memory_space<vmem>>, vector<128x128xf32>
      %cst_34 = arith.constant dense<0.000000e+00> : vector<128x128xf32>
      %46 = tpu.matmul %44, %45, %cst_34 {dimension_numbers = #tpu.dot_dimension_numbers<[1], [0], [0], [1], [0, 0, 1, 1], [], []>} : vector<128x128xf32>, vector<128x128xf32>, vector<128x128xf32> -> vector<128x128xf32>
      %cst_35 = arith.constant 0.707106769 : f32
      %47 = vector.broadcast %cst_35 : f32 to vector<128x128xf32>
      %48 = arith.mulf %46, %47 : vector<128x128xf32>
      %c0_36 = arith.constant 0 : index
      %c0_37 = arith.constant 0 : index
      %49 = vector.load %arg8[%c0_36, %c0_37] : memref<128x128xf32, #tpu.memory_space<vmem>>, vector<128x128xf32>
      tpu.vector_store %arg8[%c0_36, %c0_37], %48 {strides = array<i32>} : memref<128x128xf32, #tpu.memory_space<vmem>>, vector<128x128xf32>,
      %cst_38 = arith.constant 0xFF800000 : f32
      %50 = vector.broadcast %cst_38 : f32 to vector<128x1xf32>
      %c0_39 = arith.constant 0 : index
      %c0_40 = arith.constant 0 : index
      %51 = vector.load %arg9[%c0_39, %c0_40] : memref<128x1xf32, #tpu.memory_space<vmem>>, vector<128x1xf32>
      tpu.vector_store %arg9[%c0_39, %c0_40], %50 {strides = array<i32>} : memref<128x1xf32, #tpu.memory_space<vmem>>, vector<128x1xf32>,
      %cst_41 = arith.constant 0.000000e+00 : f32
      %52 = vector.broadcast %cst_41 : f32 to vector<128x1xf32>
      %c0_42 = arith.constant 0 : index
      %c0_43 = arith.constant 0 : index
      %53 = vector.load %arg10[%c0_42, %c0_43] : memref<128x1xf32, #tpu.memory_space<vmem>>, vector<128x1xf32>
      tpu.vector_store %arg10[%c0_42, %c0_43], %52 {strides = array<i32>} : memref<128x1xf32, #tpu.memory_space<vmem>>, vector<128x1xf32>,
      %cst_44 = arith.constant 0.000000e+00 : f32
      %54 = vector.broadcast %cst_44 : f32 to vector<128x128xf32>
      %c0_45 = arith.constant 0 : index
      %c0_46 = arith.constant 0 : index
      %55 = vector.load %arg11[%c0_45, %c0_46] : memref<128x128xf32, #tpu.memory_space<vmem>>, vector<128x128xf32>
      tpu.vector_store %arg11[%c0_45, %c0_46], %54 {strides = array<i32>} : memref<128x128xf32, #tpu.memory_space<vmem>>, vector<128x128xf32>,
    } else {
    }
    %c0 = arith.constant 0 : index
    %c0_1 = arith.constant 0 : index
    %3 = vector.load %arg3[%c0, %c0_1] : memref<128x128xf32, #tpu.memory_space<vmem>>, vector<128x128xf32>
    %c0_2 = arith.constant 0 : index
    %c0_3 = arith.constant 0 : index
    %4 = vector.load %arg5[%c0_2, %c0_3] : memref<128x128xf32, #tpu.memory_space<vmem>>, vector<128x128xf32>
    %cst = arith.constant dense<0.000000e+00> : vector<128x128xf32>
    %5 = tpu.matmul %3, %4, %cst {dimension_numbers = #tpu.dot_dimension_numbers<[1], [0], [0], [1], [0, 0, 1, 1], [], []>} : vector<128x128xf32>, vector<128x128xf32>, vector<128x128xf32> -> vector<128x128xf32>
    %c0_4 = arith.constant 0 : index
    %c0_5 = arith.constant 0 : index
    %6 = vector.load %arg3[%c0_4, %c0_5] : memref<128x128xf32, #tpu.memory_space<vmem>>, vector<128x128xf32>
    %c0_6 = arith.constant 0 : index
    %c0_7 = arith.constant 0 : index
    %7 = vector.load %arg6[%c0_6, %c0_7] : memref<128x128xf32, #tpu.memory_space<vmem>>, vector<128x128xf32>
    %cst_8 = arith.constant dense<0.000000e+00> : vector<128x128xf32>
    %8 = tpu.matmul %6, %7, %cst_8 {dimension_numbers = #tpu.dot_dimension_numbers<[1], [0], [0], [1], [0, 0, 1, 1], [], []>} : vector<128x128xf32>, vector<128x128xf32>, vector<128x128xf32> -> vector<128x128xf32>
    %c0_9 = arith.constant 0 : index
    %c0_10 = arith.constant 0 : index
    %9 = vector.load %arg8[%c0_9, %c0_10] : memref<128x128xf32, #tpu.memory_space<vmem>>, vector<128x128xf32>
    %cst_11 = arith.constant dense<0.000000e+00> : vector<128x128xf32>
    %10 = tpu.matmul %9, %5, %cst_11 {dimension_numbers = #tpu.dot_dimension_numbers<[1], [1], [0], [0], [0, 0, 1, 0], [], []>} : vector<128x128xf32>, vector<128x128xf32>, vector<128x128xf32> -> vector<128x128xf32>
    %c128_i32 = arith.constant 128 : i32
    %11 = arith.muli %arg1, %c128_i32 : i32
    %12 = tpu.iota {dimensions = array<i32: 1>} : vector<128x128xi32>
    %13 = vector.broadcast %11 : i32 to vector<128x128xi32>
    %14 = arith.addi %13, %12 : vector<128x128xi32>
    %c6_i32 = arith.constant 6 : i32
    %15 = vector.broadcast %c6_i32 : i32 to vector<128x128xi32>
    %16 = arith.cmpi slt, %14, %15 : vector<128x128xi32>
    %cst_12 = arith.constant -1.000000e+30 : f32
    %17 = vector.broadcast %cst_12 : f32 to vector<128x128xf32>
    %18 = arith.select %16, %10, %17 : vector<128x128xi1>, vector<128x128xf32>
    %c0_13 = arith.constant 0 : index
    %c0_14 = arith.constant 0 : index
    %19 = vector.load %arg9[%c0_13, %c0_14] : memref<128x1xf32, #tpu.memory_space<vmem>>, vector<128x1xf32>
    %cst_15 = arith.constant dense<0xFF800000> : vector<128xf32>
    %20 = vector.multi_reduction <maximumf>, %18, %cst_15 [1] : vector<128x128xf32> to vector<128xf32>
    %21 = vector.shape_cast %20 : vector<128xf32> to vector<128x1xf32>
    %22 = arith.maximumf %19, %21 : vector<128x1xf32>
    %23 = arith.subf %19, %22 : vector<128x1xf32>
    %24 = math.exp %23 : vector<128x1xf32>
    %25 = vector.broadcast %22 : vector<128x1xf32> to vector<128x128xf32>
    %26 = arith.subf %18, %25 : vector<128x128xf32>
    %27 = math.exp %26 : vector<128x128xf32>
    %c0_16 = arith.constant 0 : index
    %c0_17 = arith.constant 0 : index
    %28 = vector.load %arg10[%c0_16, %c0_17] : memref<128x1xf32, #tpu.memory_space<vmem>>, vector<128x1xf32>
    %29 = arith.mulf %24, %28 : vector<128x1xf32>
    %cst_18 = arith.constant dense<0.000000e+00> : vector<128xf32>
    %30 = vector.multi_reduction <add>, %27, %cst_18 [1] : vector<128x128xf32> to vector<128xf32>
    %31 = vector.shape_cast %30 : vector<128xf32> to vector<128x1xf32>
    %32 = arith.addf %29, %31 : vector<128x1xf32>
    %c0_19 = arith.constant 0 : index
    %c0_20 = arith.constant 0 : index
    %33 = vector.load %arg10[%c0_19, %c0_20] : memref<128x1xf32, #tpu.memory_space<vmem>>, vector<128x1xf32>
    tpu.vector_store %arg10[%c0_19, %c0_20], %32 {strides = array<i32>} : memref<128x1xf32, #tpu.memory_space<vmem>>, vector<128x1xf32>,
    %c0_21 = arith.constant 0 : index
    %c0_22 = arith.constant 0 : index
    %34 = vector.load %arg11[%c0_21, %c0_22] : memref<128x128xf32, #tpu.memory_space<vmem>>, vector<128x128xf32>
    %35 = vector.broadcast %24 : vector<128x1xf32> to vector<128x128xf32>
    %36 = arith.mulf %35, %34 : vector<128x128xf32>
    %cst_23 = arith.constant dense<0.000000e+00> : vector<128x128xf32>
    %37 = tpu.matmul %27, %8, %cst_23 {dimension_numbers = #tpu.dot_dimension_numbers<[1], [0], [0], [1], [0, 0, 1, 1], [], []>} : vector<128x128xf32>, vector<128x128xf32>, vector<128x128xf32> -> vector<128x128xf32>
    %38 = arith.addf %36, %37 : vector<128x128xf32>
    %c0_24 = arith.constant 0 : index
    %c0_25 = arith.constant 0 : index
    %39 = vector.load %arg11[%c0_24, %c0_25] : memref<128x128xf32, #tpu.memory_space<vmem>>, vector<128x128xf32>
    tpu.vector_store %arg11[%c0_24, %c0_25], %38 {strides = array<i32>} : memref<128x128xf32, #tpu.memory_space<vmem>>, vector<128x128xf32>,
    %c0_26 = arith.constant 0 : index
    %c0_27 = arith.constant 0 : index
    %40 = vector.load %arg9[%c0_26, %c0_27] : memref<128x1xf32, #tpu.memory_space<vmem>>, vector<128x1xf32>
    tpu.vector_store %arg9[%c0_26, %c0_27], %22 {strides = array<i32>} : memref<128x1xf32, #tpu.memory_space<vmem>>, vector<128x1xf32>,
    %c0_i32_28 = arith.constant 0 : i32
    %41 = arith.cmpi eq, %arg1, %c0_i32_28 : i32
    %42 = arith.extui %41 : i1 to i32
    %c0_i32_29 = arith.constant 0 : i32
    %43 = arith.cmpi ne, %42, %c0_i32_29 : i32
    scf.if %43 {
      %c0_30 = arith.constant 0 : index
      %c0_31 = arith.constant 0 : index
      %44 = vector.load %arg10[%c0_30, %c0_31] : memref<128x1xf32, #tpu.memory_space<vmem>>, vector<128x1xf32>
      %45 = tpu.reciprocal %44 {approx = true} : vector<128x1xf32> -> vector<128x1xf32>
      %46 = arith.mulf %44, %45 : vector<128x1xf32>
      %cst_32 = arith.constant 2.000000e+00 : f32
      %47 = vector.broadcast %cst_32 : f32 to vector<128x1xf32>
      %48 = arith.subf %47, %46 : vector<128x1xf32>
      %49 = arith.mulf %45, %48 : vector<128x1xf32>
      %c0_33 = arith.constant 0 : index
      %c0_34 = arith.constant 0 : index
      %50 = vector.load %arg11[%c0_33, %c0_34] : memref<128x128xf32, #tpu.memory_space<vmem>>, vector<128x128xf32>
      %51 = vector.broadcast %49 : vector<128x1xf32> to vector<128x128xf32>
      %52 = arith.mulf %50, %51 : vector<128x128xf32>
      %c0_35 = arith.constant 0 : index
      %c0_36 = arith.constant 0 : index
      %53 = vector.load %arg7[%c0_35, %c0_36] : memref<128x128xf32, #tpu.memory_space<vmem>>, vector<128x128xf32>
      tpu.vector_store %arg7[%c0_35, %c0_36], %52 {strides = array<i32>} : memref<128x128xf32, #tpu.memory_space<vmem>>, vector<128x128xf32>,
    } else {
    }
    return
  }
  func.func @transform_0(%arg0: i32, %arg1: i32) -> (i32, i32) {
    %c0_i32 = arith.constant 0 : i32
    %c0_i32_0 = arith.constant 0 : i32
    return %arg0, %c0_i32 : i32, i32
  }
  func.func @transform_1(%arg0: i32, %arg1: i32) -> (i32, i32) {
    %c0_i32 = arith.constant 0 : i32
    %c0_i32_0 = arith.constant 0 : i32
    return %arg1, %c0_i32 : i32, i32
  }
  func.func @transform_2(%arg0: i32, %arg1: i32) -> (i32, i32) {
    %c0_i32 = arith.constant 0 : i32
    %c0_i32_0 = arith.constant 0 : i32
    %c0_i32_1 = arith.constant 0 : i32
    return %c0_i32, %c0_i32_0 : i32, i32
  }
  func.func @transform_3(%arg0: i32, %arg1: i32) -> (i32, i32) {
    %c0_i32 = arith.constant 0 : i32
    %c0_i32_0 = arith.constant 0 : i32
    %c0_i32_1 = arith.constant 0 : i32
    return %c0_i32, %c0_i32_0 : i32, i32
  }
  func.func @transform_4(%arg0: i32, %arg1: i32) -> (i32, i32) {
    %c0_i32 = arith.constant 0 : i32
    %c0_i32_0 = arith.constant 0 : i32
    %c0_i32_1 = arith.constant 0 : i32
    return %c0_i32, %c0_i32_0 : i32, i32
  }
  func.func @transform_5(%arg0: i32, %arg1: i32) -> (i32, i32) {
    %c0_i32 = arith.constant 0 : i32
    %c0_i32_0 = arith.constant 0 : i32
    return %arg0, %c0_i32 : i32, i32
  }
}

</mosaic_0001>

<bundles_post_ra>
// kernel: tpu_custom_call.1
= control target key start
LH: loop header
LB: loop body
LE: loop exit
PB: predicated region body
PF: predicated region fallthrough
CT: control target
= control target key end

     0   :  { %10 = vsyncpa [#allocation7], 0  ;;  %s3228_s0 = inlined_call_operand.hbm [shape: f32[128,128], index: 0, kind: input, shape index: {}]   ;;  %s3229_s1 = inlined_call_operand.hbm [shape: f32[128,128], index: 1, kind: input, shape index: {}]   ;;  %s3230_s2 = inlined_call_operand.hbm [shape: f32[128,128], index: 2, kind: input, shape index: {}]   ;;  %s3231_s3 = inlined_call_operand.hbm [shape: f32[128,128], index: 3, kind: input, shape index: {}]   ;;  %s3232_s4 = inlined_call_operand.hbm [shape: f32[128,128], index: 4, kind: input, shape index: {}]   ;;  %s3233_s5 = inlined_call_operand.hbm [shape: f32[128,128], index: 5, kind: output, shape index: {}]  }
   0x1   :  { %11 = vsyncpa [#allocation10], 0 }
   0x2   :  { %12 = vsyncpa [#allocation13], 0 }
   0x3   :  { %13 = vsyncpa [#allocation8], 0  ;;  %s2593_s18 = smov [#allocation9]   ;;  %s2594_s20 = smov [#allocation12]  }
   0x4   :  { %s31_s19 = sshll.u32 %s2593_s18, 4  ;;  %s55_s21 = sshll.u32 %s2594_s20, 4  ;;  %s32_s19 = int_to_ptr.vmem [resolvable:$true] %s31_s19  ;;  %s2634_s21 = int_to_ptr.vmem [resolvable:$true] %s55_s21 }
   0x5   :  { %s2453_s24 = scalar_lea.hbm %s3229_s1, 2048 }
   0x6   :  { %p2454_p0 = scmp.ne.s32.totalorder %s3229_s1, %s2453_s24  ;;  %p2457_p1 = scmp.lt.u32.totalorder %s2453_s24, %s3229_s1 }
   0x8   :  { %p2459_p2 = pnand %p2457_p1, %p2454_p0 }
   0xa   :  { %2462 = shalt.err (!%p2459_p2)
}
   0xb   :  { %s2463_s29 = scalar_lea.vmem %s32_s19, 2048  ;;  %p2468_p4 = scmp.lt.s32.totalorder %s32_s19, %s32_s19 }
   0xc   :  { %p2464_p3 = scmp.ne.s32.totalorder %s32_s19, %s2463_s29  ;;  %p2469_p5 = scmp.lt.s32.totalorder %s2463_s29, %s2463_s29 }
   0xe   :  { %p2470_p6 = por %p2469_p5, %p2468_p4 }
  0x10   :  { %p2471_p7 = pnand %p2470_p6, %p2464_p3 }
  0x12   :  { %2474 = shalt.err (!%p2471_p7)
}
  0x13   :  { %s2595_s30 = smov 128   ;;  %s2596_s6 = smov 8  }
  0x14   :  { %37 = dma.hbm_to_vmem [thread:$0]  %s3229_s1, 2048, %s32_s19, [#allocation10], %s2595_s30, %s2595_s30, %s2596_s6  }
  0x15   :  { %s2475_s11 = scalar_lea.hbm %s3231_s3, 2048 }
  0x16   :  { %p2476_p8 = scmp.ne.s32.totalorder %s3231_s3, %s2475_s11  ;;  %p2479_p9 = scmp.lt.u32.totalorder %s2475_s11, %s3231_s3 }
  0x18   :  { %p2481_p10 = pnand %p2479_p9, %p2476_p8 }
  0x1a   :  { %2484 = shalt.err (!%p2481_p10)
}
  0x1b   :  { %s2485_s16 = scalar_lea.vmem %s2634_s21, 2048  ;;  %p2490_p12 = scmp.lt.s32.totalorder %s2634_s21, %s2634_s21 }
  0x1c   :  { %p2486_p11 = scmp.ne.s32.totalorder %s2634_s21, %s2485_s16  ;;  %p2491_p13 = scmp.lt.s32.totalorder %s2485_s16, %s2485_s16 }
  0x1e   :  { %p2492_p0 = por %p2491_p13, %p2490_p12 }
  0x20   :  { %p2493_p1 = pnand %p2492_p0, %p2486_p11 }
  0x22   :  { %2496 = shalt.err (!%p2493_p1)
}
  0x23   :  { %61 = dma.hbm_to_vmem [thread:$0]  %s3231_s3, 2048, %s2634_s21, [#allocation13], %s2595_s30, %s2595_s30, %s2596_s6  }
  0x24   :  { %s2597_s18 = smov [#allocation6]   ;;  %s2598_s20 = smov [#allocation11]  }
  0x25   :  { %s19_s19 = sshll.u32 %s2597_s18, 4  ;;  %s43_s22 = sshll.u32 %s2598_s20, 4  ;;  %s20_s19 = int_to_ptr.vmem [resolvable:$true] %s19_s19  ;;  %s2671_s22 = int_to_ptr.vmem [resolvable:$true] %s43_s22 }
  0x26   :  { %s2497_s25 = scalar_lea.hbm %s3228_s0, 2048 }
  0x27   :  { %p2498_p2 = scmp.ne.s32.totalorder %s3228_s0, %s2497_s25  ;;  %p2501_p3 = scmp.lt.u32.totalorder %s2497_s25, %s3228_s0 }
  0x29   :  { %p2503_p4 = pnand %p2501_p3, %p2498_p2 }
  0x2b   :  { %2506 = shalt.err (!%p2503_p4)
}
  0x2c   :  { %s2507_s3 = scalar_lea.vmem %s20_s19, 2048  ;;  %p2512_p6 = scmp.lt.s32.totalorder %s20_s19, %s20_s19 }
  0x2d   :  { %p2508_p5 = scmp.ne.s32.totalorder %s20_s19, %s2507_s3  ;;  %p2513_p7 = scmp.lt.s32.totalorder %s2507_s3, %s2507_s3 }
  0x2f   :  { %p2514_p8 = por %p2513_p7, %p2512_p6 }
  0x31   :  { %p2515_p9 = pnand %p2514_p8, %p2508_p5 }
  0x33   :  { %2518 = shalt.err (!%p2515_p9)
}
  0x34   :  { %25 = dma.hbm_to_vmem [thread:$0]  %s3228_s0, 2048, %s20_s19, [#allocation7], %s2595_s30, %s2595_s30, %s2596_s6  }
  0x35   :  { %s2519_s10 = scalar_lea.hbm %s3230_s2, 2048 }
  0x36   :  { %p2520_p10 = scmp.ne.s32.totalorder %s3230_s2, %s2519_s10  ;;  %p2523_p11 = scmp.lt.u32.totalorder %s2519_s10, %s3230_s2 }
  0x38   :  { %p2525_p12 = pnand %p2523_p11, %p2520_p10 }
  0x3a   :  { %2528 = shalt.err (!%p2525_p12)
}
  0x3b   :  { %s2529_s15 = scalar_lea.vmem %s2671_s22, 2048  ;;  %p2534_p0 = scmp.lt.s32.totalorder %s2671_s22, %s2671_s22 }
  0x3c   :  { %p2530_p13 = scmp.ne.s32.totalorder %s2671_s22, %s2529_s15  ;;  %p2535_p1 = scmp.lt.s32.totalorder %s2529_s15, %s2529_s15 }
  0x3e   :  { %p2536_p2 = por %p2535_p1, %p2534_p0 }
  0x40   :  { %p2537_p3 = pnand %p2536_p2, %p2530_p13 }
  0x42   :  { %2540 = shalt.err (!%p2537_p3)
}
  0x43   :  { %49 = dma.hbm_to_vmem [thread:$0]  %s3230_s2, 2048, %s2671_s22, [#allocation10], %s2595_s30, %s2595_s30, %s2596_s6  }
  0x44   :  { %s2599_s1 = smov [#allocation14]   ;;  %s2541_s20 = scalar_lea.hbm %s3232_s4, 2048 }
  0x45   :  { %s67_s17 = sshll.u32 %s2599_s1, 4  ;;  %p2542_p4 = scmp.ne.s32.totalorder %s3232_s4, %s2541_s20  ;;  %s68_s17 = int_to_ptr.vmem [resolvable:$true] %s67_s17 }
  0x46   :  { %p2545_p5 = scmp.lt.u32.totalorder %s2541_s20, %s3232_s4 }
  0x48   :  { %p2547_p6 = pnand %p2545_p5, %p2542_p4 }
  0x4a   :  { %2550 = shalt.err (!%p2547_p6)
}
  0x4b   :  { %s2551_s27 = scalar_lea.vmem %s68_s17, 2048  ;;  %p2556_p8 = scmp.lt.s32.totalorder %s68_s17, %s68_s17 }
  0x4c   :  { %p2552_p7 = scmp.ne.s32.totalorder %s68_s17, %s2551_s27  ;;  %p2557_p9 = scmp.lt.s32.totalorder %s2551_s27, %s2551_s27 }
  0x4e   :  { %p2558_p10 = por %p2557_p9, %p2556_p8 }
  0x50   :  { %p2559_p11 = pnand %p2558_p10, %p2552_p7 }
  0x52   :  { %2562 = shalt.err (!%p2559_p11)
}
  0x53   :  { %73 = dma.hbm_to_vmem [thread:$0]  %s3232_s4, 2048, %s68_s17, [#allocation13], %s2595_s30, %s2595_s30, %s2596_s6  }
  0x54   :  { %2585 = dma.done.wait [#allocation7], 2048  }
  0x55   :  { %2586 = vsyncadd [#allocation7], 4294965248 }
  0x56   :  { %2587 = dma.done.wait [#allocation10], 4096  }
  0x57   :  { %2588 = vsyncadd [#allocation10], 4294963200 }
  0x58   :  { %2589 = dma.done.wait [#allocation13], 4096  }
  0x59   :  { %2590 = vsyncadd [#allocation13], 4294963200  ;;  %v367_v0 = vld [vmem:[#allocation12] sm:$0xff]  ;;  %v368_v1 = vld [vmem:[#allocation12 + $0x8] sm:$0xff]  ;;  %vm302_vm0 = vcmask 7168   ;;  %s2603_s4 = smov [#allocation15]  }
  0x5a   :  { %v369_v2 = vld [vmem:[#allocation12 + $0x10] sm:$0xff]  ;;  %v2216_v3 = vpack.c.bf16 %v368_v1, %v367_v0  ;;  %v370_v4 = vld [vmem:[#allocation12 + $0x18] sm:$0xff]  ;;  %v371_v6 = vld [vmem:[#allocation12 + $0x20] sm:$0xff]  ;;  %s1730_s28 = sshll.u32 %s2603_s4, 4  ;;  %s1731_s28 = int_to_ptr.vmem [resolvable:$true] %s1730_s28 }
  0x5b   :  { %v2220_v5 = vpack.c.bf16 %v370_v4, %v369_v2  ;;  %v372_v7 = vld [vmem:[#allocation12 + $0x28] sm:$0xff]  ;;  %v2723_v9 = vld [vmem:[#allocation9] sm:$0xff]  ;;  %v373_v10 = vld [vmem:[#allocation12 + $0x30] sm:$0xff]  ;;  %s2563_s29 = scalar_lea.vmem %s1731_s28, 2048  ;;  %p2568_p13 = scmp.lt.s32.totalorder %s1731_s28, %s1731_s28 }
  0x5c   :  { %2217 = vmatprep.subr.bf16.mxu1 %v2216_v3  ;;  %v2224_v8 = vpack.c.bf16 %v372_v7, %v371_v6  ;;  %v374_v11 = vld [vmem:[#allocation12 + $0x38] sm:$0xff]  ;;  %1992 = vmatprep.mubr.f32.mxu1 %v2723_v9  ;;  %v109_v12 = vld [vmem:[#allocation11] sm:$0xff]  ;;  %v110_v13 = vld [vmem:[#allocation11 + $0x8] sm:$0xff]  ;;  %p2564_p12 = scmp.ne.s32.totalorder %s1731_s28, %s2563_s29  ;;  %p2569_p0 = scmp.lt.s32.totalorder %s2563_s29, %s2563_s29 }
  0x5d   :  { %2219 = vmatpush3.bf16.msra.mxu1 %v2216_v3  ;;  %v2228_v14 = vpack.c.bf16 %v374_v11, %v373_v10  ;;  %v375_v15 = vld [vmem:[#allocation12 + $0x40] sm:$0xff]  ;;  %v2184_v16 = vpack.c.bf16 %v110_v13, %v109_v12  ;;  %v111_v17 = vld [vmem:[#allocation11 + $0x10] sm:$0xff]  ;;  %v112_v18 = vld [vmem:[#allocation11 + $0x18] sm:$0xff] }
  0x5e   :  { %2221 = vmatprep.subr.bf16.mxu1 %v2220_v5  ;;  %v376_v19 = vld [vmem:[#allocation12 + $0x48] sm:$0xff]  ;;  %v2188_v20 = vpack.c.bf16 %v112_v18, %v111_v17  ;;  %v113_v21 = vld [vmem:[#allocation11 + $0x20] sm:$0xff]  ;;  %v377_v24 = vld [vmem:[#allocation12 + $0x50] sm:$0xff]  ;;  %p2570_p1 = por %p2569_p0, %p2568_p13 }
  0x5f   :  { %v114_v22 = vld [vmem:[#allocation11 + $0x28] sm:$0xff]  ;;  %2185 = vmatprep.subr.bf16.mxu0 %v2184_v16  ;;  %v2232_v23 = vpack.c.bf16 %v376_v19, %v375_v15  ;;  %v378_v26 = vld [vmem:[#allocation12 + $0x58] sm:$0xff]  ;;  %v115_v27 = vld [vmem:[#allocation11 + $0x30] sm:$0xff] }
  0x60   :  { %2187 = vmatpush3.bf16.msra.mxu0 %v2184_v16  ;;  %v2192_v25 = vpack.c.bf16 %v114_v22, %v113_v21  ;;  %v116_v28 = vld [vmem:[#allocation11 + $0x38] sm:$0xff]  ;;  %v93_v29 = vld [vmem:[#allocation6] sm:$0xff]  ;;  %v2236_v30 = vpack.c.bf16 %v378_v26, %v377_v24  ;;  %v380_v33 = vld [vmem:[#allocation12 + $0x68] sm:$0xff]  ;;  %p2571_p2 = pnand %p2570_p1, %p2564_p12 }
  0x61   :  { %2223 = vmatpush3.bf16.msra.mxu1 %v2220_v5  ;;  %2189 = vmatprep.subr.bf16.mxu0 %v2188_v20  ;;  %v379_v31 = vld [vmem:[#allocation12 + $0x60] sm:$0xff]  ;;  %v2196_v32 = vpack.c.bf16 %v116_v28, %v115_v27  ;;  %v118_v35 = vld [vmem:[#allocation11 + $0x48] sm:$0xff]  ;;  %v381_v37 = vld [vmem:[#allocation12 + $0x70] sm:$0xff] }
  0x62   :  { %2225 = vmatprep.subr.bf16.mxu1 %v2224_v8  ;;  %v117_v34 = vld [vmem:[#allocation11 + $0x40] sm:$0xff]  ;;  %1936 = vmatprep.mubr.f32.mxu0 %v93_v29  ;;  %v2240_v36 = vpack.c.bf16 %v380_v33, %v379_v31  ;;  %v382_v39 = vld [vmem:[#allocation12 + $0x78] sm:$0xff]  ;;  %v119_v40 = vld [vmem:[#allocation11 + $0x50] sm:$0xff] }
  0x63   :  { %v2200_v38 = vpack.c.bf16 %v118_v35, %v117_v34  ;;  %v120_v41 = vld [vmem:[#allocation11 + $0x58] sm:$0xff]  ;;  %v2244_v42 = vpack.c.bf16 %v382_v39, %v381_v37  ;;  %v121_v44 = vld [vmem:[#allocation11 + $0x60] sm:$0xff]  ;;  %v122_v45 = vld [vmem:[#allocation11 + $0x68] sm:$0xff] }
  0x64   :  { %2191 = vmatpush3.bf16.msra.mxu0 %v2188_v20  ;;  %v2204_v43 = vpack.c.bf16 %v120_v41, %v119_v40  ;;  %v2208_v46 = vpack.c.bf16 %v122_v45, %v121_v44  ;;  %v123_v47 = vld [vmem:[#allocation11 + $0x70] sm:$0xff]  ;;  %v124_v48 = vld [vmem:[#allocation11 + $0x78] sm:$0xff]  ;;  %v2726_v49 = vld [vmem:[#allocation9 + $0x8] sm:$0xff] }
  0x65   :  { %2227 = vmatpush3.bf16.msra.mxu1 %v2224_v8  ;;  %2193 = vmatprep.subr.bf16.mxu0 %v2192_v25  ;;  %v2728_v50 = vld [vmem:[#allocation9 + $0x10] sm:$0xff]  ;;  %v2212_v51 = vpack.c.bf16 %v124_v48, %v123_v47  ;;  %v2732_v52 = vld [vmem:[#allocation9 + $0x18] sm:$0xff]  ;;  %v2734_v53 = vld [vmem:[#allocation9 + $0x20] sm:$0xff] }
  0x66   :  { %2229 = vmatprep.subr.bf16.mxu1 %v2228_v14  ;;  %v2738_v54 = vld [vmem:[#allocation9 + $0x28] sm:$0xff]  ;;  %v2740_v56 = vld [vmem:[#allocation9 + $0x30] sm:$0xff]  ;;  %v2744_v58 = vld [vmem:[#allocation9 + $0x38] sm:$0xff] }
  0x67   :  { %v94_v55 = vld [vmem:[#allocation6 + $0x8] sm:$0xff]  ;;  %v95_v57 = vld [vmem:[#allocation6 + $0x10] sm:$0xff]  ;;  %v96_v59 = vld [vmem:[#allocation6 + $0x18] sm:$0xff] }
  0x68   :  { %2195 = vmatpush3.bf16.msra.mxu0 %v2192_v25  ;;  %v2746_v60 = vld [vmem:[#allocation9 + $0x40] sm:$0xff]  ;;  %v2750_v62 = vld [vmem:[#allocation9 + $0x48] sm:$0xff]  ;;  %v2752_v0 = vld [vmem:[#allocation9 + $0x50] sm:$0xff] }
  0x69   :  { %2231 = vmatpush3.bf16.msra.mxu1 %v2228_v14  ;;  %2197 = vmatprep.subr.bf16.mxu0 %v2196_v32  ;;  %v97_v61 = vld [vmem:[#allocation6 + $0x20] sm:$0xff]  ;;  %v98_v63 = vld [vmem:[#allocation6 + $0x28] sm:$0xff]  ;;  %v99_v1 = vld [vmem:[#allocation6 + $0x30] sm:$0xff] }
  0x6a   :  { %2233 = vmatprep.subr.bf16.mxu1 %v2232_v23  ;;  %v2756_v2 = vld [vmem:[#allocation9 + $0x58] sm:$0xff]  ;;  %v2758_v4 = vld [vmem:[#allocation9 + $0x60] sm:$0xff]  ;;  %v2762_v6 = vld [vmem:[#allocation9 + $0x68] sm:$0xff] }
  0x6b   :  { %v100_v3 = vld [vmem:[#allocation6 + $0x38] sm:$0xff]  ;;  %v101_v5 = vld [vmem:[#allocation6 + $0x40] sm:$0xff]  ;;  %v102_v7 = vld [vmem:[#allocation6 + $0x48] sm:$0xff] }
  0x6c   :  { %2199 = vmatpush3.bf16.msra.mxu0 %v2196_v32  ;;  %v2764_v8 = vld [vmem:[#allocation9 + $0x70] sm:$0xff]  ;;  %v2768_v11 = vld [vmem:[#allocation9 + $0x78] sm:$0xff]  ;;  %v105_v13 = vld [vmem:[#allocation6 + $0x60] sm:$0xff] }
  0x6d   :  { %2235 = vmatpush3.bf16.msra.mxu1 %v2232_v23  ;;  %2201 = vmatprep.subr.bf16.mxu0 %v2200_v38  ;;  %v103_v10 = vld [vmem:[#allocation6 + $0x50] sm:$0xff]  ;;  %v104_v12 = vld [vmem:[#allocation6 + $0x58] sm:$0xff]  ;;  %v106_v14 = vld [vmem:[#allocation6 + $0x68] sm:$0xff] }
  0x6e   :  { %2237 = vmatprep.subr.bf16.mxu1 %v2236_v30  ;;  %v107_v15 = vld [vmem:[#allocation6 + $0x70] sm:$0xff]  ;;  %v108_v16 = vld [vmem:[#allocation6 + $0x78] sm:$0xff] }
  0x70   :  { %2203 = vmatpush3.bf16.msra.mxu0 %v2200_v38 }
  0x71   :  { %2239 = vmatpush3.bf16.msra.mxu1 %v2236_v30  ;;  %2205 = vmatprep.subr.bf16.mxu0 %v2204_v43 }
  0x72   :  { %2241 = vmatprep.subr.bf16.mxu1 %v2240_v36 }
  0x74   :  { %2207 = vmatpush3.bf16.msra.mxu0 %v2204_v43 }
  0x75   :  { %2243 = vmatpush3.bf16.msra.mxu1 %v2240_v36  ;;  %2209 = vmatprep.subr.bf16.mxu0 %v2208_v46 }
  0x76   :  { %2245 = vmatprep.subr.bf16.mxu1 %v2244_v42 }
  0x78   :  { %2211 = vmatpush3.bf16.msra.mxu0 %v2208_v46 }
  0x79   :  { %2247 = vmatpush3.bf16.msra.mxu1 %v2244_v42  ;;  %2213 = vmatprep.subr.bf16.mxu0 %v2212_v51 }
  0x7c   :  { %1993 = vmatmul.mubr.f32.vlgmr.msra.gmra.mrb[0].mxu1 %v2726_v49  ;;  %2215 = vmatpush3.bf16.msra.mxu0 %v2212_v51 }
  0x7d   :  { %1995 = vmatprep.mubr.f32.mxu1 %v2728_v50 }
  0x7f   :  { %1937 = vmatmul.mubr.f32.vlgmr.msra.gmra.mrb[0].mxu0 %v94_v55 }
  0x80   :  { %1996 = vmatmul.mubr.f32.gmra.mrb[2].mxu1 %v2732_v52  ;;  %1939 = vmatprep.mubr.f32.mxu0 %v95_v57 }
  0x81   :  { %1998 = vmatprep.mubr.f32.mxu1 %v2734_v53 }
  0x83   :  { %1940 = vmatmul.mubr.f32.gmra.mrb[2].mxu0 %v96_v59 }
  0x84   :  { %1999 = vmatmul.mubr.f32.gmra.mrb[4].mxu1 %v2738_v54  ;;  %1942 = vmatprep.mubr.f32.mxu0 %v97_v61 }
  0x85   :  { %2001 = vmatprep.mubr.f32.mxu1 %v2740_v56 }
  0x87   :  { %1943 = vmatmul.mubr.f32.gmra.mrb[4].mxu0 %v98_v63 }
  0x88   :  { %2002 = vmatmul.mubr.f32.gmra.mrb[6].mxu1 %v2744_v58  ;;  %1945 = vmatprep.mubr.f32.mxu0 %v99_v1 }
  0x89   :  { %2004 = vmatprep.mubr.f32.mxu1 %v2746_v60 }
  0x8b   :  { %1946 = vmatmul.mubr.f32.gmra.mrb[6].mxu0 %v100_v3 }
  0x8c   :  { %2005 = vmatmul.mubr.f32.gmra.mrb[8].mxu1 %v2750_v62  ;;  %1948 = vmatprep.mubr.f32.mxu0 %v101_v5 }
  0x8d   :  { %2007 = vmatprep.mubr.f32.mxu1 %v2752_v0 }
  0x8f   :  { %1949 = vmatmul.mubr.f32.gmra.mrb[8].mxu0 %v102_v7 }
  0x90   :  { %2008 = vmatmul.mubr.f32.gmra.mrb[10].mxu1 %v2756_v2  ;;  %1951 = vmatprep.mubr.f32.mxu0 %v103_v10 }
  0x91   :  { %2010 = vmatprep.mubr.f32.mxu1 %v2758_v4 }
  0x93   :  { %1952 = vmatmul.mubr.f32.gmra.mrb[10].mxu0 %v104_v12 }
  0x94   :  { %2011 = vmatmul.mubr.f32.gmra.mrb[12].mxu1 %v2762_v6  ;;  %1954 = vmatprep.mubr.f32.mxu0 %v105_v13 }
  0x95   :  { %2013 = vmatprep.mubr.f32.mxu1 %v2764_v8 }
  0x97   :  { %1955 = vmatmul.mubr.f32.gmra.mrb[12].mxu0 %v106_v14 }
  0x98   :  { %2014 = vmatmul.mubr.f32.gmra.mrb[14].mxu1 %v2768_v11  ;;  %1957 = vmatprep.mubr.f32.mxu0 %v107_v15 }
  0x9b   :  { %1958 = vmatmul.mubr.f32.gmra.mrb[14].mxu0 %v108_v16 }
  0x9c   :  { %2048 = vmatprep.mubr.f32.mxu0 %v2723_v9 }
 0x14f   :  { %v1994_v17 = vpop.f32.mrb[0].mxu1 }
 0x150   :  { %v449_v18 = vpop.f32.mrb[1].mxu1 }
 0x151   :  { %v2280_v19 = vpack.c.bf16 %v1994_v17, %v449_v18 }
 0x152   :  { %v1938_v24 = vpop.f32.mrb[0].mxu0 }
 0x153   :  { %2281 = vmatprep.subr.bf16.mxu1 %v2280_v19  ;;  %v1997_v20 = vpop.f32.mrb[2].mxu1  ;;  %v191_v26 = vpop.f32.mrb[1].mxu0  ;;  %v271_v7 = vmul.f32 0.70710677, %v1938_v24  ;;  %v528_v24 = vld [vmem:[#allocation14] sm:$0xff] }
 0x154   :  { %2283 = vmatpush3.bf16.xpose.msra.mxu1 %v2280_v19  ;;  %v459_v21 = vpop.f32.mrb[3].mxu1  ;;  %v270_v28 = vmul.f32 0.70710677, %v191_v26 }
 0x155   :  { %v2284_v22 = vpack.c.bf16 %v1997_v20, %v459_v21 }
 0x156   :  { %2104 = vmatprep.mubr.f32.mxu1 %v270_v28  ;;  %v1941_v30 = vpop.f32.mrb[2].mxu0  ;;  %v531_v28 = vld [vmem:[#allocation14 + $0x18] sm:$0xff] }
 0x157   :  { %2285 = vmatprep.subr.bf16.mxu1 %v2284_v22  ;;  %v2000_v23 = vpop.f32.mrb[4].mxu1  ;;  %v201_v31 = vpop.f32.mrb[3].mxu0  ;;  %v273_v10 = vmul.f32 0.70710677, %v1941_v30  ;;  %v532_v30 = vld [vmem:[#allocation14 + $0x20] sm:$0xff] }
 0x158   :  { %v469_v25 = vpop.f32.mrb[5].mxu1  ;;  %v272_v5 = vmul.f32 0.70710677, %v201_v31 }
 0x159   :  { %v2288_v27 = vpack.c.bf16 %v2000_v23, %v469_v25  ;;  %v529_v25 = vld [vmem:[#allocation14 + $0x8] sm:$0xff] }
 0x15a   :  { %v1944_v34 = vpop.f32.mrb[4].mxu0  ;;  %v2248_v26 = vpack.c.bf16 %v529_v25, %v528_v24 }
 0x15b   :  { %v2003_v29 = vpop.f32.mrb[6].mxu1  ;;  %v211_v36 = vpop.f32.mrb[5].mxu0  ;;  %v275_v13 = vmul.f32 0.70710677, %v1944_v34 }
 0x15c   :  { %2287 = vmatpush3.bf16.xpose.msra.mxu1 %v2284_v22  ;;  %v479_v9 = vpop.f32.mrb[7].mxu1  ;;  %v274_v12 = vmul.f32 0.70710677, %v211_v36  ;;  %2249 = vmatprep.subr.bf16.mxu0 %v2248_v26  ;;  %v537_v36 = vld [vmem:[#allocation14 + $0x48] sm:$0xff] }
 0x15d   :  { %2289 = vmatprep.subr.bf16.mxu1 %v2288_v27  ;;  %v2292_v32 = vpack.c.bf16 %v2003_v29, %v479_v9  ;;  %2251 = vmatpush3.bf16.msra.mxu0 %v2248_v26  ;;  %v533_v9 = vld [vmem:[#allocation14 + $0x28] sm:$0xff] }
 0x15e   :  { %v1947_v39 = vpop.f32.mrb[6].mxu0  ;;  %v2256_v31 = vpack.c.bf16 %v533_v9, %v532_v30 }
 0x15f   :  { %v2006_v33 = vpop.f32.mrb[8].mxu1  ;;  %v221_v41 = vpop.f32.mrb[7].mxu0  ;;  %v277_v15 = vmul.f32 0.70710677, %v1947_v39  ;;  %v539_v39 = vld [vmem:[#allocation14 + $0x58] sm:$0xff] }
 0x160   :  { %v489_v35 = vpop.f32.mrb[9].mxu1  ;;  %v276_v14 = vmul.f32 0.70710677, %v221_v41  ;;  %v540_v41 = vld [vmem:[#allocation14 + $0x60] sm:$0xff] }
 0x161   :  { %v2296_v37 = vpack.c.bf16 %v2006_v33, %v489_v35  ;;  %v535_v33 = vld [vmem:[#allocation14 + $0x38] sm:$0xff]  ;;  %v536_v35 = vld [vmem:[#allocation14 + $0x40] sm:$0xff] }
 0x162   :  { %v1950_v44 = vpop.f32.mrb[8].mxu0 }
 0x163   :  { %v2009_v38 = vpop.f32.mrb[10].mxu1  ;;  %v231_v46 = vpop.f32.mrb[9].mxu0  ;;  %v279_v17 = vmul.f32 0.70710677, %v1950_v44 }
 0x164   :  { %2291 = vmatpush3.bf16.xpose.msra.mxu1 %v2288_v27  ;;  %v499_v40 = vpop.f32.mrb[11].mxu1  ;;  %v278_v16 = vmul.f32 0.70710677, %v231_v46  ;;  %v530_v27 = vld [vmem:[#allocation14 + $0x10] sm:$0xff]  ;;  %v2600_v46 = vmov -inf  }
 0x165   :  { %2293 = vmatprep.subr.bf16.mxu1 %v2292_v32  ;;  %v2300_v42 = vpack.c.bf16 %v2009_v38, %v499_v40  ;;  %v2252_v29 = vpack.c.bf16 %v531_v28, %v530_v27  ;;  %v538_v38 = vld [vmem:[#allocation14 + $0x50] sm:$0xff]  ;;  %303 = vst.msk [vmem:[#allocation3] sm:$0xff] %vm302_vm0, %v2600_v46  ;;  %304 = vst.msk [vmem:[#allocation3 + $0x8] sm:$0xff] %vm302_vm0, %v2600_v46 }
 0x166   :  { %v1953_v51 = vpop.f32.mrb[10].mxu0  ;;  %v2268_v40 = vpack.c.bf16 %v539_v39, %v538_v38  ;;  %305 = vst.msk [vmem:[#allocation3 + $0x10] sm:$0xff] %vm302_vm0, %v2600_v46  ;;  %306 = vst.msk [vmem:[#allocation3 + $0x18] sm:$0xff] %vm302_vm0, %v2600_v46 }
 0x167   :  { %v2012_v43 = vpop.f32.mrb[12].mxu1  ;;  %v241_v57 = vpop.f32.mrb[11].mxu0  ;;  %v281_v19 = vmul.f32 0.70710677, %v1953_v51  ;;  %2253 = vmatprep.subr.bf16.mxu0 %v2252_v29  ;;  %307 = vst.msk [vmem:[#allocation3 + $0x20] sm:$0xff] %vm302_vm0, %v2600_v46  ;;  %308 = vst.msk [vmem:[#allocation3 + $0x28] sm:$0xff] %vm302_vm0, %v2600_v46 }
 0x168   :  { %v509_v45 = vpop.f32.mrb[13].mxu1  ;;  %v280_v18 = vmul.f32 0.70710677, %v241_v57  ;;  %2255 = vmatpush3.bf16.msra.mxu0 %v2252_v29  ;;  %309 = vst.msk [vmem:[#allocation3 + $0x30] sm:$0xff] %vm302_vm0, %v2600_v46  ;;  %310 = vst.msk [vmem:[#allocation3 + $0x38] sm:$0xff] %vm302_vm0, %v2600_v46 }
 0x169   :  { %v2304_v47 = vpack.c.bf16 %v2012_v43, %v509_v45  ;;  %2257 = vmatprep.subr.bf16.mxu0 %v2256_v31  ;;  %v542_v43 = vld [vmem:[#allocation14 + $0x70] sm:$0xff]  ;;  %v543_v45 = vld [vmem:[#allocation14 + $0x78] sm:$0xff]  ;;  %311 = vst.msk [vmem:[#allocation3 + $0x40] sm:$0xff] %vm302_vm0, %v2600_v46  ;;  %312 = vst.msk [vmem:[#allocation3 + $0x48] sm:$0xff] %vm302_vm0, %v2600_v46 }
 0x16a   :  { %v1956_v61 = vpop.f32.mrb[12].mxu0  ;;  %313 = vst.msk [vmem:[#allocation3 + $0x50] sm:$0xff] %vm302_vm0, %v2600_v46  ;;  %314 = vst.msk [vmem:[#allocation3 + $0x58] sm:$0xff] %vm302_vm0, %v2600_v46 }
 0x16b   :  { %v2015_v48 = vpop.f32.mrb[14].mxu1  ;;  %v251_v63 = vpop.f32.mrb[13].mxu0  ;;  %v283_v21 = vmul.f32 0.70710677, %v1956_v61  ;;  %315 = vst.msk [vmem:[#allocation3 + $0x60] sm:$0xff] %vm302_vm0, %v2600_v46  ;;  %316 = vst.msk [vmem:[#allocation3 + $0x68] sm:$0xff] %vm302_vm0, %v2600_v46 }
 0x16c   :  { %2295 = vmatpush3.bf16.xpose.msra.mxu1 %v2292_v32  ;;  %v519_v55 = vpop.f32.mrb[15].mxu1  ;;  %v282_v20 = vmul.f32 0.70710677, %v251_v63  ;;  %2259 = vmatpush3.bf16.msra.mxu0 %v2256_v31  ;;  %v534_v32 = vld [vmem:[#allocation14 + $0x30] sm:$0xff]  ;;  %317 = vst.msk [vmem:[#allocation3 + $0x70] sm:$0xff] %vm302_vm0, %v2600_v46  ;;  %318 = vst.msk [vmem:[#allocation3 + $0x78] sm:$0xff] %vm302_vm0, %v2600_v46 }
 0x16d   :  { %2297 = vmatprep.subr.bf16.mxu1 %v2296_v37  ;;  %v2308_v59 = vpack.c.bf16 %v2015_v48, %v519_v55  ;;  %v2260_v34 = vpack.c.bf16 %v535_v33, %v534_v32  ;;  %v2601_v63 = vmov 0   ;;  %v2902_v30 = vld [vmem:[#allocation3] sm:$0xff] }
 0x16e   :  { %v1959_v1 = vpop.f32.mrb[14].mxu0  ;;  %2355 = vset.pattern.permute.xlu0 %v2601_v63  ;;  %2356 = vset.pattern.permute.xlu1 %v2601_v63 }
 0x16f   :  { %v261_v3 = vpop.f32.mrb[15].mxu0  ;;  %v285_v23 = vmul.f32 0.70710677, %v1959_v1  ;;  %2261 = vmatprep.subr.bf16.mxu0 %v2260_v34 }
 0x170   :  { %v284_v22 = vmul.f32 0.70710677, %v261_v3  ;;  %2263 = vmatpush3.bf16.msra.mxu0 %v2260_v34 }
 0x174   :  { %2299 = vmatpush3.bf16.xpose.msra.mxu1 %v2296_v37  ;;  %v2264_v37 = vpack.c.bf16 %v537_v36, %v536_v35  ;;  %v2907_v35 = vld [vmem:[#allocation3 + $0x18] sm:$0xff]  ;;  %v2909_v36 = vld [vmem:[#allocation3 + $0x8] sm:$0xff] }
 0x175   :  { %2301 = vmatprep.subr.bf16.mxu1 %v2300_v42 }
 0x176   :  { %2265 = vmatprep.subr.bf16.mxu0 %v2264_v37 }
 0x177   :  { %2267 = vmatpush3.bf16.msra.mxu0 %v2264_v37 }
 0x178   :  { %2269 = vmatprep.subr.bf16.mxu0 %v2268_v40 }
 0x17b   :  { %2271 = vmatpush3.bf16.msra.mxu0 %v2268_v40 }
 0x17c   :  { %2303 = vmatpush3.bf16.xpose.msra.mxu1 %v2300_v42  ;;  %v541_v42 = vld [vmem:[#allocation14 + $0x68] sm:$0xff] }
 0x17d   :  { %2305 = vmatprep.subr.bf16.mxu1 %v2304_v47  ;;  %v2272_v44 = vpack.c.bf16 %v541_v42, %v540_v41 }
 0x17f   :  { %2273 = vmatprep.subr.bf16.mxu0 %v2272_v44 }
 0x180   :  { %2275 = vmatpush3.bf16.msra.mxu0 %v2272_v44 }
 0x184   :  { %2307 = vmatpush3.bf16.xpose.msra.mxu1 %v2304_v47  ;;  %v2276_v47 = vpack.c.bf16 %v543_v45, %v542_v43  ;;  %v2922_v45 = vld [vmem:[#allocation3 + $0x10] sm:$0xff] }
 0x185   :  { %2309 = vmatprep.subr.bf16.mxu1 %v2308_v59 }
 0x186   :  { %2277 = vmatprep.subr.bf16.mxu0 %v2276_v47 }
 0x187   :  { %2279 = vmatpush3.bf16.msra.mxu0 %v2276_v47  ;;  %v2928_v47 = vld [vmem:[#allocation3 + $0x20] sm:$0xff] }
 0x18a   :  { %2049 = vmatmul.mubr.f32.vlgmr.msra.gmra.mrb[16].mxu0 %v2726_v49  ;;  %v851_v49 = vlaneseq }
 0x18b   :  { %2051 = vmatprep.mubr.f32.mxu0 %v2728_v50 }
 0x18c   :  { %2311 = vmatpush3.bf16.xpose.msra.mxu1 %v2308_v59  ;;  %v2803_v50 = vand.u32 127, %v851_v49 }
 0x18e   :  { %2052 = vmatmul.mubr.f32.gmra.mrb[18].mxu0 %v2732_v52  ;;  %vm855_vm1 = vcmp.lt.s32.totalorder %v2803_v50, 6 }
 0x18f   :  { %2054 = vmatprep.mubr.f32.mxu0 %v2734_v53 }
 0x192   :  { %2055 = vmatmul.mubr.f32.gmra.mrb[20].mxu0 %v2738_v54 }
 0x193   :  { %2105 = vmatmul.mubr.f32.vlgmr.msra.gmra.mrb[16].mxu1 %v271_v7  ;;  %2057 = vmatprep.mubr.f32.mxu0 %v2740_v56 }
 0x194   :  { %2107 = vmatprep.mubr.f32.mxu1 %v272_v5 }
 0x196   :  { %2058 = vmatmul.mubr.f32.gmra.mrb[22].mxu0 %v2744_v58 }
 0x197   :  { %2108 = vmatmul.mubr.f32.gmra.mrb[18].mxu1 %v273_v10  ;;  %2060 = vmatprep.mubr.f32.mxu0 %v2746_v60 }
 0x198   :  { %2110 = vmatprep.mubr.f32.mxu1 %v274_v12 }
 0x19a   :  { %2061 = vmatmul.mubr.f32.gmra.mrb[24].mxu0 %v2750_v62 }
 0x19b   :  { %2111 = vmatmul.mubr.f32.gmra.mrb[20].mxu1 %v275_v13  ;;  %2063 = vmatprep.mubr.f32.mxu0 %v2752_v0 }
 0x19c   :  { %2113 = vmatprep.mubr.f32.mxu1 %v276_v14 }
 0x19e   :  { %2064 = vmatmul.mubr.f32.gmra.mrb[26].mxu0 %v2756_v2 }
 0x19f   :  { %2114 = vmatmul.mubr.f32.gmra.mrb[22].mxu1 %v277_v15  ;;  %2066 = vmatprep.mubr.f32.mxu0 %v2758_v4 }
 0x1a0   :  { %2116 = vmatprep.mubr.f32.mxu1 %v278_v16  ;;  %v2602_v16 = vmov 0.0  }
 0x1a1   :  { %319 = vst.msk [vmem:[#allocation4] sm:$0xff] %vm302_vm0, %v2602_v16  ;;  %320 = vst.msk [vmem:[#allocation4 + $0x8] sm:$0xff] %vm302_vm0, %v2602_v16 }
 0x1a2   :  { %2067 = vmatmul.mubr.f32.gmra.mrb[28].mxu0 %v2762_v6  ;;  %321 = vst.msk [vmem:[#allocation4 + $0x10] sm:$0xff] %vm302_vm0, %v2602_v16  ;;  %322 = vst.msk [vmem:[#allocation4 + $0x18] sm:$0xff] %vm302_vm0, %v2602_v16 }
 0x1a3   :  { %2117 = vmatmul.mubr.f32.gmra.mrb[24].mxu1 %v279_v17  ;;  %2069 = vmatprep.mubr.f32.mxu0 %v2764_v8  ;;  %323 = vst.msk [vmem:[#allocation4 + $0x20] sm:$0xff] %vm302_vm0, %v2602_v16  ;;  %324 = vst.msk [vmem:[#allocation4 + $0x28] sm:$0xff] %vm302_vm0, %v2602_v16 }
 0x1a4   :  { %2119 = vmatprep.mubr.f32.mxu1 %v280_v18  ;;  %325 = vst.msk [vmem:[#allocation4 + $0x30] sm:$0xff] %vm302_vm0, %v2602_v16  ;;  %326 = vst.msk [vmem:[#allocation4 + $0x38] sm:$0xff] %vm302_vm0, %v2602_v16 }
 0x1a5   :  { %327 = vst.msk [vmem:[#allocation4 + $0x40] sm:$0xff] %vm302_vm0, %v2602_v16  ;;  %328 = vst.msk [vmem:[#allocation4 + $0x48] sm:$0xff] %vm302_vm0, %v2602_v16 }
 0x1a6   :  { %2070 = vmatmul.mubr.f32.gmra.mrb[30].mxu0 %v2768_v11  ;;  %329 = vst.msk [vmem:[#allocation4 + $0x50] sm:$0xff] %vm302_vm0, %v2602_v16  ;;  %330 = vst.msk [vmem:[#allocation4 + $0x58] sm:$0xff] %vm302_vm0, %v2602_v16 }
 0x1a7   :  { %2120 = vmatmul.mubr.f32.gmra.mrb[26].mxu1 %v281_v19  ;;  %331 = vst.msk [vmem:[#allocation4 + $0x60] sm:$0xff] %vm302_vm0, %v2602_v16  ;;  %332 = vst.msk [vmem:[#allocation4 + $0x68] sm:$0xff] %vm302_vm0, %v2602_v16 }
 0x1a8   :  { %2122 = vmatprep.mubr.f32.mxu1 %v282_v20  ;;  %333 = vst.msk [vmem:[#allocation4 + $0x70] sm:$0xff] %vm302_vm0, %v2602_v16  ;;  %334 = vst.msk [vmem:[#allocation4 + $0x78] sm:$0xff] %vm302_vm0, %v2602_v16 }
 0x1ab   :  { %2123 = vmatmul.mubr.f32.gmra.mrb[28].mxu1 %v283_v21 }
 0x1ac   :  { %2125 = vmatprep.mubr.f32.mxu1 %v284_v22 }
 0x1af   :  { %2126 = vmatmul.mubr.f32.gmra.mrb[30].mxu1 %v285_v23 }
 0x25d   :  { %v2050_v21 = vpop.f32.mrb[16].mxu0 }
 0x25e   :  { %v610_v22 = vpop.f32.mrb[17].mxu0 }
 0x25f   :  { %v2312_v23 = vpack.c.bf16 %v2050_v21, %v610_v22  ;;  %v2966_v22 = vld [vmem:[#allocation3 + $0x40] sm:$0xff] }
 0x261   :  { %v2053_v24 = vpop.f32.mrb[18].mxu0  ;;  %2313 = vmatprep.subr.bf16.mxu0 %v2312_v23 }
 0x262   :  { %v620_v25 = vpop.f32.mrb[19].mxu0  ;;  %2315 = vmatpush3.bf16.msra.mxu0 %v2312_v23 }
 0x263   :  { %v2316_v26 = vpack.c.bf16 %v2053_v24, %v620_v25 }
 0x265   :  { %v2056_v27 = vpop.f32.mrb[20].mxu0  ;;  %2317 = vmatprep.subr.bf16.mxu0 %v2316_v26 }
 0x266   :  { %v2106_v52 = vpop.f32.mrb[16].mxu1  ;;  %v630_v28 = vpop.f32.mrb[21].mxu0  ;;  %2319 = vmatpush3.bf16.msra.mxu0 %v2316_v26 }
 0x267   :  { %v771_v53 = vpop.f32.mrb[17].mxu1  ;;  %v2818_v62 = vsel %vm855_vm1, %v2106_v52, -1e+30  ;;  %v2320_v29 = vpack.c.bf16 %v2056_v27, %v630_v28 }
 0x268   :  { %v2808_v54 = vsel %vm855_vm1, %v771_v53, -1e+30 }
 0x269   :  { %888 = vmax.xlane.f32.xlu0 %v2808_v54  ;;  %v2059_v9 = vpop.f32.mrb[22].mxu0  ;;  %2321 = vmatprep.subr.bf16.mxu0 %v2320_v29 }
 0x26a   :  { %v2109_v56 = vpop.f32.mrb[18].mxu1  ;;  %v640_v31 = vpop.f32.mrb[23].mxu0  ;;  %2323 = vmatpush3.bf16.msra.mxu0 %v2320_v29 }
 0x26b   :  { %v2813_v58 = vsel %vm855_vm1, %v2109_v56, -1e+30  ;;  %v781_v60 = vpop.f32.mrb[19].mxu1  ;;  %v2324_v33 = vpack.c.bf16 %v2059_v9, %v640_v31  ;;  %v2976_v9 = vld [vmem:[#allocation3 + $0x48] sm:$0xff] }
 0x26c   :  { %894 = vmax.xlane.f32.xlu1 %v2813_v58  ;;  %v2823_v0 = vsel %vm855_vm1, %v781_v60, -1e+30 }
 0x26d   :  { %890 = vmax.xlane.f32.xlu0 %v2818_v62  ;;  %v2062_v37 = vpop.f32.mrb[24].mxu0  ;;  %2325 = vmatprep.subr.bf16.mxu0 %v2324_v33 }
 0x26e   :  { %v2112_v2 = vpop.f32.mrb[20].mxu1  ;;  %v650_v40 = vpop.f32.mrb[25].mxu0  ;;  %2327 = vmatpush3.bf16.msra.mxu0 %v2324_v33  ;;  %v2985_v33 = vld [vmem:[#allocation3 + $0x50] sm:$0xff] }
 0x26f   :  { %v791_v4 = vpop.f32.mrb[21].mxu1  ;;  %v2832_v8 = vsel %vm855_vm1, %v2112_v2, -1e+30  ;;  %v2328_v43 = vpack.c.bf16 %v2062_v37, %v650_v40 }
 0x270   :  { %892 = vmax.xlane.f32.xlu1 %v2823_v0  ;;  %v2828_v6 = vsel %vm855_vm1, %v791_v4, -1e+30  ;;  %v2938_v4 = vld [vmem:[#allocation3 + $0x28] sm:$0xff] }
 0x271   :  { %896 = vmax.xlane.f32.xlu0 %v2828_v6  ;;  %v2065_v49 = vpop.f32.mrb[26].mxu0  ;;  %2329 = vmatprep.subr.bf16.mxu0 %v2328_v43 }
 0x272   :  { %v2115_v11 = vpop.f32.mrb[22].mxu1  ;;  %v660_v53 = vpop.f32.mrb[27].mxu0  ;;  %2331 = vmatpush3.bf16.msra.mxu0 %v2328_v43  ;;  %v2995_v43 = vld [vmem:[#allocation3 + $0x58] sm:$0xff] }
 0x273   :  { %v801_v48 = vpop.f32.mrb[23].mxu1  ;;  %v2842_v55 = vsel %vm855_vm1, %v2115_v11, -1e+30  ;;  %v2332_v2 = vpack.c.bf16 %v2065_v49, %v660_v53  ;;  %v3005_v53 = vld [vmem:[#allocation3 + $0x60] sm:$0xff] }
 0x274   :  { %898 = vmax.xlane.f32.xlu1 %v2832_v8  ;;  %v2838_v51 = vsel %vm855_vm1, %v801_v48, -1e+30 }
 0x275   :  { %900 = vmax.xlane.f32.xlu0 %v2838_v51  ;;  %2333 = vmatprep.subr.bf16.mxu0 %v2332_v2 }
 0x276   :  { %v2118_v57 = vpop.f32.mrb[24].mxu1  ;;  %2335 = vmatpush3.bf16.msra.mxu0 %v2332_v2 }
 0x277   :  { %v811_v59 = vpop.f32.mrb[25].mxu1  ;;  %v2852_v1 = vsel %vm855_vm1, %v2118_v57, -1e+30  ;;  %v2947_v57 = vld [vmem:[#allocation3 + $0x30] sm:$0xff] }
 0x278   :  { %902 = vmax.xlane.f32.xlu1 %v2842_v55  ;;  %v2848_v61 = vsel %vm855_vm1, %v811_v59, -1e+30  ;;  %v2068_v59 = vpop.f32.mrb[28].mxu0 }
 0x279   :  { %904 = vmax.xlane.f32.xlu0 %v2848_v61 }
 0x27a   :  { %v2121_v3 = vpop.f32.mrb[26].mxu1 }
 0x27b   :  { %v821_v5 = vpop.f32.mrb[27].mxu1  ;;  %v2862_v10 = vsel %vm855_vm1, %v2121_v3, -1e+30 }
 0x27c   :  { %906 = vmax.xlane.f32.xlu1 %v2852_v1  ;;  %v2858_v7 = vsel %vm855_vm1, %v821_v5, -1e+30  ;;  %v670_v5 = vpop.f32.mrb[29].mxu0 }
 0x27d   :  { %908 = vmax.xlane.f32.xlu0 %v2858_v7  ;;  %v2336_v16 = vpack.c.bf16 %v2068_v59, %v670_v5  ;;  %v2071_v23 = vpop.f32.mrb[30].mxu0  ;;  %v3015_v5 = vld [vmem:[#allocation3 + $0x68] sm:$0xff] }
 0x27e   :  { %v2124_v12 = vpop.f32.mrb[28].mxu1  ;;  %v680_v26 = vpop.f32.mrb[31].mxu0 }
 0x27f   :  { %v831_v13 = vpop.f32.mrb[29].mxu1  ;;  %v2872_v15 = vsel %vm855_vm1, %v2124_v12, -1e+30  ;;  %2337 = vmatprep.subr.bf16.mxu0 %v2336_v16  ;;  %v2340_v29 = vpack.c.bf16 %v2071_v23, %v680_v26  ;;  %v3025_v23 = vld [vmem:[#allocation3 + $0x70] sm:$0xff] }
 0x280   :  { %910 = vmax.xlane.f32.xlu1 %v2862_v10  ;;  %v2868_v14 = vsel %vm855_vm1, %v831_v13, -1e+30  ;;  %2339 = vmatpush3.bf16.msra.mxu0 %v2336_v16 }
 0x281   :  { %912 = vmax.xlane.f32.xlu0 %v2868_v14  ;;  %2341 = vmatprep.subr.bf16.mxu0 %v2340_v29 }
 0x282   :  { %v2127_v17 = vpop.f32.mrb[30].mxu1 }
 0x283   :  { %v841_v18 = vpop.f32.mrb[31].mxu1  ;;  %v2898_v20 = vsel %vm855_vm1, %v2127_v17, -1e+30  ;;  %v2957_v17 = vld [vmem:[#allocation3 + $0x38] sm:$0xff] }
 0x284   :  { %914 = vmax.xlane.f32.xlu1 %v2872_v15  ;;  %v2894_v19 = vsel %vm855_vm1, %v841_v18, -1e+30  ;;  %2343 = vmatpush3.bf16.msra.mxu0 %v2340_v29 }
 0x285   :  { %916 = vmax.xlane.f32.xlu0 %v2894_v19 }
 0x288   :  { %918 = vmax.xlane.f32.xlu1 %v2898_v20 }
 0x2f6   :  { %v889_v32 = vpop.xlane.xlu0 %888 }
 0x2f7   :  { %v2905_v34 = vmax.f32 %v2902_v30, %v889_v32 }
 0x2f9   :  { %1498 = vst.msk [vmem:[#allocation3] sm:$0xff] %vm302_vm0, %v2905_v34  ;;  %v895_v39 = vpop.xlane.xlu1 %894  ;;  %986 = vperm.xlu0 %2355, %v2905_v34  }
 0x2fa   :  { %v2917_v41 = vmax.f32 %v2907_v35, %v895_v39  ;;  %v891_v42 = vpop.xlane.xlu0 %890 }
 0x2fb   :  { %v2920_v44 = vmax.f32 %v2909_v36, %v891_v42 }
 0x2fc   :  { %1501 = vst.msk [vmem:[#allocation3 + $0x18] sm:$0xff] %vm302_vm0, %v2917_v41 }
 0x2fd   :  { %v937_v50 = vsub.f32 %v2909_v36, %v2920_v44  ;;  %1499 = vst.msk [vmem:[#allocation3 + $0x8] sm:$0xff] %vm302_vm0, %v2920_v44  ;;  %v893_v52 = vpop.xlane.xlu1 %892  ;;  %991 = vperm.xlu1 %2356, %v2920_v44   ;;  %v3236_v36 = vsub.f32 %v2907_v35, %v2917_v41 }
 0x2fe   :  { %v2936_v56 = vmax.f32 %v2922_v45, %v893_v52  ;;  %v897_v60 = vpop.xlane.xlu0 %896 }
 0x2ff   :  { %v2941_v11 = vmax.f32 %v2928_v47, %v897_v60  ;;  %v958_v44 = vmul.f32 1.442695, %v3236_v36 }
 0x300   :  { %v938_v48 = vsub.f32 %v2922_v45, %v2936_v56  ;;  %1500 = vst.msk [vmem:[#allocation3 + $0x10] sm:$0xff] %vm302_vm0, %v2936_v56 }
 0x301   :  { %v899_v63 = vpop.xlane.xlu1 %898  ;;  %1001 = vperm.xlu1 %2356, %v2917_v41   ;;  %1502 = vst.msk [vmem:[#allocation3 + $0x20] sm:$0xff] %vm302_vm0, %v2941_v11 }
 0x302   :  { %v2955_v12 = vmax.f32 %v2938_v4, %v899_v63  ;;  %v901_v13 = vpop.xlane.xlu0 %900 }
 0x303   :  { %v2960_v18 = vmax.f32 %v2947_v57, %v901_v13 }
 0x304   :  { %1503 = vst.msk [vmem:[#allocation3 + $0x28] sm:$0xff] %vm302_vm0, %v2955_v12 }
 0x305   :  { %v903_v24 = vpop.xlane.xlu1 %902  ;;  %996 = vperm.xlu1 %2356, %v2936_v56   ;;  %1504 = vst.msk [vmem:[#allocation3 + $0x30] sm:$0xff] %vm302_vm0, %v2960_v18 }
 0x306   :  { %v2974_v27 = vmax.f32 %v2957_v17, %v903_v24  ;;  %v905_v28 = vpop.xlane.xlu0 %904 }
 0x307   :  { %v2979_v31 = vmax.f32 %v2966_v22, %v905_v28 }
 0x308   :  { %1505 = vst.msk [vmem:[#allocation3 + $0x38] sm:$0xff] %vm302_vm0, %v2974_v27  ;;  %v3240_v35 = vsub.f32 %v2957_v17, %v2974_v27 }
 0x309   :  { %v907_v37 = vpop.xlane.xlu1 %906  ;;  %1011 = vperm.xlu1 %2356, %v2955_v12   ;;  %1506 = vst.msk [vmem:[#allocation3 + $0x40] sm:$0xff] %vm302_vm0, %v2979_v31 }
 0x30a   :  { %v2993_v40 = vmax.f32 %v2976_v9, %v907_v37  ;;  %v909_v42 = vpop.xlane.xlu0 %908  ;;  %v3035_v37 = vld [vmem:[#allocation3 + $0x78] sm:$0xff]  ;;  %v966_v41 = vmul.f32 1.442695, %v3240_v35  ;;  %v1118_v35 = vld [vmem:[#allocation4 + $0x30] sm:$0xff] }
 0x30b   :  { %v2998_v49 = vmax.f32 %v2985_v33, %v909_v42 }
 0x30c   :  { %1507 = vst.msk [vmem:[#allocation3 + $0x48] sm:$0xff] %vm302_vm0, %v2993_v40  ;;  %1031 = vperm.xlu0 %2355, %v2993_v40  }
 0x30d   :  { %v911_v60 = vpop.xlane.xlu1 %910  ;;  %1006 = vperm.xlu1 %2356, %v2941_v11   ;;  %1508 = vst.msk [vmem:[#allocation3 + $0x50] sm:$0xff] %vm302_vm0, %v2998_v49 }
 0x30e   :  { %v3013_v59 = vmax.f32 %v2995_v43, %v911_v60  ;;  %v913_v63 = vpop.xlane.xlu0 %912 }
 0x30f   :  { %v3018_v13 = vmax.f32 %v3005_v53, %v913_v63 }
 0x310   :  { %1509 = vst.msk [vmem:[#allocation3 + $0x58] sm:$0xff] %vm302_vm0, %v3013_v59  ;;  %1041 = vperm.xlu0 %2355, %v3013_v59  }
 0x311   :  { %v915_v24 = vpop.xlane.xlu1 %914  ;;  %1021 = vperm.xlu1 %2356, %v2974_v27   ;;  %1510 = vst.msk [vmem:[#allocation3 + $0x60] sm:$0xff] %vm302_vm0, %v3018_v13  ;;  %v3243_v17 = vsub.f32 %v3005_v53, %v3018_v13 }
 0x312   :  { %v3033_v28 = vmax.f32 %v3015_v5, %v915_v24  ;;  %v917_v29 = vpop.xlane.xlu0 %916 }
 0x313   :  { %v3038_v42 = vmax.f32 %v3025_v23, %v917_v29  ;;  %v976_v27 = vmul.f32 1.442695, %v3243_v17 }
 0x314   :  { %1511 = vst.msk [vmem:[#allocation3 + $0x68] sm:$0xff] %vm302_vm0, %v3033_v28  ;;  %1051 = vperm.xlu0 %2355, %v3033_v28   ;;  %v3246_v53 = vsub.f32 %v3015_v5, %v3033_v28 }
 0x315   :  { %1016 = vperm.xlu1 %2356, %v2960_v18   ;;  %v919_v63 = vpop.xlane.xlu1 %918  ;;  %1512 = vst.msk [vmem:[#allocation3 + $0x70] sm:$0xff] %vm302_vm0, %v3038_v42 }
 0x316   :  { %v3051_v29 = vmax.f32 %v3035_v37, %v919_v63 }
 0x318   :  { %1513 = vst.msk [vmem:[#allocation3 + $0x78] sm:$0xff] %vm302_vm0, %v3051_v29  ;;  %1061 = vperm.xlu0 %2355, %v3051_v29  }
 0x319   :  { %1026 = vperm.xlu1 %2356, %v2979_v31  }
 0x31d   :  { %1036 = vperm.xlu1 %2356, %v2998_v49  }
 0x321   :  { %1046 = vperm.xlu1 %2356, %v3018_v13  }
 0x325   :  { %1056 = vperm.xlu1 %2356, %v3038_v42  }
 0x378   :  { %v987_v24 = vpop.permute.xlu0 %986 }
 0x379   :  { %v1064_v63 = vsub.f32 %v2808_v54, %v987_v24 }
 0x37b   :  { %v1080_v16 = vmul.f32 1.442695, %v1064_v63 }
 0x37c   :  { %v992_v26 = vpop.permute.xlu1 %991 }
 0x37d   :  { %2357 = vpow2.f32 %v1080_v16  ;;  %v1065_v60 = vsub.f32 %v2818_v62, %v992_v26 }
 0x37f   :  { %v1082_v52 = vmul.f32 1.442695, %v1065_v60 }
 0x380   :  { %v1002_v2 = vpop.permute.xlu1 %1001 }
 0x381   :  { %2359 = vpow2.f32 %v1082_v52  ;;  %v1067_v32 = vsub.f32 %v2813_v58, %v1002_v2 }
 0x383   :  { %v1086_v39 = vmul.f32 1.442695, %v1067_v32 }
 0x384   :  { %v997_v21 = vpop.permute.xlu1 %996 }
 0x385   :  { %2361 = vpow2.f32 %v1086_v39  ;;  %v1066_v25 = vsub.f32 %v2823_v0, %v997_v21 }
 0x387   :  { %v2358_v46 = vpop.eup %2357  ;;  %v1084_v3 = vmul.f32 1.442695, %v1066_v25 }
 0x388   :  { %v1012_v38 = vpop.permute.xlu1 %1011  ;;  %1144 = vadd.xlane.f32.xlu1 %v2358_v46  ;;  %2160 = vmatprep.mubr.f32.mxu0 %v2358_v46 }
 0x389   :  { %2363 = vpow2.f32 %v1084_v3  ;;  %v1069_v54 = vsub.f32 %v2832_v8, %v1012_v38 }
 0x38b   :  { %v2360_v16 = vpop.eup %2359  ;;  %v1090_v62 = vmul.f32 1.442695, %v1069_v54  ;;  %v1032_v26 = vpop.permute.xlu0 %1031 }
 0x38c   :  { %v1007_v60 = vpop.permute.xlu1 %1006  ;;  %1146 = vadd.xlane.f32.xlu0 %v2360_v16  ;;  %2161 = vmatmul.mubr.f32.vlgmr.msra.gmra.mrb[32].mxu0 %v2360_v16  ;;  %v1073_v3 = vsub.f32 %v2852_v1, %v1032_v26 }
 0x38d   :  { %2365 = vpow2.f32 %v1090_v62  ;;  %v1068_v58 = vsub.f32 %v2828_v6, %v1007_v60 }
 0x38e   :  { %v1098_v6 = vmul.f32 1.442695, %v1073_v3 }
 0x38f   :  { %v2362_v32 = vpop.eup %2361  ;;  %v1088_v39 = vmul.f32 1.442695, %v1068_v58  ;;  %v1042_v0 = vpop.permute.xlu0 %1041 }
 0x390   :  { %v1022_v21 = vpop.permute.xlu1 %1021  ;;  %1150 = vadd.xlane.f32.xlu1 %v2362_v32  ;;  %v1075_v24 = vsub.f32 %v2862_v10, %v1042_v0 }
 0x391   :  { %2367 = vpow2.f32 %v1088_v39  ;;  %v1071_v46 = vsub.f32 %v2842_v55, %v1022_v21 }
 0x392   :  { %v1102_v1 = vmul.f32 1.442695, %v1075_v24 }
 0x393   :  { %v2364_v8 = vpop.eup %2363  ;;  %v1094_v38 = vmul.f32 1.442695, %v1071_v46  ;;  %v1052_v52 = vpop.permute.xlu0 %1051 }
 0x394   :  { %v1017_v25 = vpop.permute.xlu1 %1016  ;;  %1148 = vadd.xlane.f32.xlu0 %v2364_v8  ;;  %2163 = vmatprep.mubr.f32.mxu0 %v2364_v8  ;;  %v1077_v62 = vsub.f32 %v2872_v15, %v1052_v52 }
 0x395   :  { %2369 = vpow2.f32 %v1094_v38  ;;  %v1070_v2 = vsub.f32 %v2838_v51, %v1017_v25  ;;  %2164 = vmatmul.mubr.f32.gmra.mrb[34].mxu0 %v2362_v32 }
 0x396   :  { %v1106_v10 = vmul.f32 1.442695, %v1077_v62  ;;  %v3235_v62 = vsub.f32 %v2928_v47, %v2941_v11  ;;  %v3239_v47 = vsub.f32 %v2966_v22, %v2979_v31  ;;  %v3242_v22 = vsub.f32 %v2976_v9, %v2993_v40 }
 0x397   :  { %v2366_v63 = vpop.eup %2365  ;;  %v1092_v54 = vmul.f32 1.442695, %v1070_v2  ;;  %v1062_v60 = vpop.permute.xlu0 %1061  ;;  %v3245_v9 = vsub.f32 %v3025_v23, %v3038_v42  ;;  %v3247_v23 = vsub.f32 %v3035_v37, %v3051_v29  ;;  %v1112_v29 = vld [vmem:[#allocation4] sm:$0xff] }
 0x398   :  { %v1027_v16 = vpop.permute.xlu1 %1026  ;;  %1154 = vadd.xlane.f32.xlu1 %v2366_v63  ;;  %v1079_v32 = vsub.f32 %v2898_v20, %v1062_v60  ;;  %v968_v11 = vmul.f32 1.442695, %v3239_v47  ;;  %v970_v31 = vmul.f32 1.442695, %v3242_v22 }
 0x399   :  { %2371 = vpow2.f32 %v1092_v54  ;;  %v1072_v55 = vsub.f32 %v2848_v61, %v1027_v16  ;;  %v954_v54 = vmul.f32 1.442695, %v937_v50  ;;  %v956_v16 = vmul.f32 1.442695, %v938_v48 }
 0x39a   :  { %2373 = vpow2.f32 %v1098_v6  ;;  %v1110_v46 = vmul.f32 1.442695, %v1079_v32  ;;  %v3237_v50 = vsub.f32 %v2947_v57, %v2960_v18  ;;  %v980_v40 = vmul.f32 1.442695, %v3245_v9 }
 0x39b   :  { %v2368_v26 = vpop.eup %2367  ;;  %v1096_v58 = vmul.f32 1.442695, %v1072_v55  ;;  %v3234_v55 = vsub.f32 %v2902_v30, %v2905_v34  ;;  %v3238_v30 = vsub.f32 %v2938_v4, %v2955_v12  ;;  %v3241_v4 = vsub.f32 %v2985_v33, %v2998_v49 }
 0x39c   :  { %v1037_v39 = vpop.permute.xlu1 %1036  ;;  %1152 = vadd.xlane.f32.xlu0 %v2368_v26  ;;  %2166 = vmatprep.mubr.f32.mxu0 %v2368_v26  ;;  %v960_v26 = vmul.f32 1.442695, %v3235_v62  ;;  %v964_v45 = vmul.f32 1.442695, %v3237_v50  ;;  %v3244_v33 = vsub.f32 %v2995_v43, %v3013_v59  ;;  %v978_v43 = vmul.f32 1.442695, %v3246_v53 }
 0x39d   :  { %2375 = vpow2.f32 %v1096_v58  ;;  %v1074_v51 = vsub.f32 %v2858_v7, %v1037_v39  ;;  %2167 = vmatmul.mubr.f32.gmra.mrb[36].mxu0 %v2366_v63  ;;  %v962_v34 = vmul.f32 1.442695, %v3238_v30  ;;  %v972_v57 = vmul.f32 1.442695, %v3241_v4  ;;  %v1119_v50 = vld [vmem:[#allocation4 + $0x38] sm:$0xff] }
 0x39e   :  { %2377 = vpow2.f32 %v1102_v1  ;;  %v952_v1 = vmul.f32 1.442695, %v3234_v55  ;;  %v974_v49 = vmul.f32 1.442695, %v3244_v33  ;;  %v982_v42 = vmul.f32 1.442695, %v3247_v23 }
 0x39f   :  { %v2370_v0 = vpop.eup %2369  ;;  %v1100_v61 = vmul.f32 1.442695, %v1074_v51  ;;  %v1120_v33 = vld [vmem:[#allocation4 + $0x40] sm:$0xff] }
 0x3a0   :  { %v1047_v21 = vpop.permute.xlu1 %1046  ;;  %1158 = vadd.xlane.f32.xlu1 %v2370_v0 }
 0x3a1   :  { %2379 = vpow2.f32 %v1100_v61  ;;  %v1076_v15 = vsub.f32 %v2868_v14, %v1047_v21 }
 0x3a2   :  { %2381 = vpow2.f32 %v1106_v10 }
 0x3a3   :  { %v2372_v3 = vpop.eup %2371  ;;  %v1104_v8 = vmul.f32 1.442695, %v1076_v15  ;;  %v1113_v15 = vld [vmem:[#allocation4 + $0x8] sm:$0xff] }
 0x3a4   :  { %v2374_v38 = vpop.eup %2373  ;;  %1156 = vadd.xlane.f32.xlu0 %v2372_v3  ;;  %v1057_v25 = vpop.permute.xlu1 %1056  ;;  %2169 = vmatprep.mubr.f32.mxu0 %v2372_v3 }
 0x3a5   :  { %2383 = vpow2.f32 %v1104_v8  ;;  %v1078_v7 = vsub.f32 %v2894_v19, %v1057_v25  ;;  %1162 = vadd.xlane.f32.xlu1 %v2374_v38  ;;  %2170 = vmatmul.mubr.f32.gmra.mrb[38].mxu0 %v2370_v0 }
 0x3a6   :  { %2385 = vpow2.f32 %v1110_v46 }
 0x3a7   :  { %v2376_v20 = vpop.eup %2375  ;;  %v1108_v52 = vmul.f32 1.442695, %v1078_v7 }
 0x3a8   :  { %v2378_v2 = vpop.eup %2377  ;;  %1160 = vadd.xlane.f32.xlu0 %v2376_v20  ;;  %2172 = vmatprep.mubr.f32.mxu0 %v2376_v20 }
 0x3a9   :  { %2387 = vpow2.f32 %v1108_v52  ;;  %1166 = vadd.xlane.f32.xlu1 %v2378_v2  ;;  %2173 = vmatmul.mubr.f32.gmra.mrb[40].mxu0 %v2374_v38  ;;  %v1115_v38 = vld [vmem:[#allocation4 + $0x18] sm:$0xff]  ;;  %v1114_v52 = vld [vmem:[#allocation4 + $0x10] sm:$0xff] }
 0x3aa   :  { %2389 = vpow2.f32 %v954_v54 }
 0x3ab   :  { %v2380_v14 = vpop.eup %2379  ;;  %2391 = vpow2.f32 %v956_v16 }
 0x3ac   :  { %v2382_v6 = vpop.eup %2381  ;;  %1164 = vadd.xlane.f32.xlu0 %v2380_v14  ;;  %2175 = vmatprep.mubr.f32.mxu0 %v2380_v14  ;;  %2393 = vpow2.f32 %v952_v1  ;;  %v1116_v1 = vld [vmem:[#allocation4 + $0x20] sm:$0xff] }
 0x3ad   :  { %1170 = vadd.xlane.f32.xlu1 %v2382_v6  ;;  %2176 = vmatmul.mubr.f32.gmra.mrb[42].mxu0 %v2378_v2  ;;  %2395 = vpow2.f32 %v960_v26 }
 0x3ae   :  { %2397 = vpow2.f32 %v958_v44 }
 0x3af   :  { %v2384_v24 = vpop.eup %2383  ;;  %2399 = vpow2.f32 %v964_v45 }
 0x3b0   :  { %v2386_v63 = vpop.eup %2385  ;;  %1168 = vadd.xlane.f32.xlu0 %v2384_v24  ;;  %2178 = vmatprep.mubr.f32.mxu0 %v2384_v24  ;;  %2401 = vpow2.f32 %v962_v34 }
 0x3b1   :  { %1174 = vadd.xlane.f32.xlu1 %v2386_v63  ;;  %2179 = vmatmul.mubr.f32.gmra.mrb[44].mxu0 %v2382_v6  ;;  %2403 = vpow2.f32 %v968_v11 }
 0x3b2   :  { %2405 = vpow2.f32 %v966_v41 }
 0x3b3   :  { %v2388_v19 = vpop.eup %2387  ;;  %2407 = vpow2.f32 %v972_v57  ;;  %v1121_v57 = vld [vmem:[#allocation4 + $0x48] sm:$0xff] }
 0x3b4   :  { %1172 = vadd.xlane.f32.xlu0 %v2388_v19  ;;  %2181 = vmatprep.mubr.f32.mxu0 %v2388_v19  ;;  %v2390_v56 = vpop.eup %2389  ;;  %2409 = vpow2.f32 %v970_v31 }
 0x3b5   :  { %2182 = vmatmul.mubr.f32.gmra.mrb[46].mxu0 %v2386_v63  ;;  %v3102_v48 = vpop.eup %2391  ;;  %2411 = vpow2.f32 %v976_v27  ;;  %v1129_v3 = vmul.f32 %v2390_v56, %v1113_v15  ;;  %v1117_v63 = vld [vmem:[#allocation4 + $0x28] sm:$0xff] }
 0x3b6   :  { %v2394_v12 = vpop.eup %2393  ;;  %2413 = vpow2.f32 %v974_v49  ;;  %v1130_v6 = vmul.f32 %v3102_v48, %v1114_v52 }
 0x3b7   :  { %v3111_v18 = vpop.eup %2395  ;;  %2415 = vpow2.f32 %v980_v40  ;;  %v1128_v61 = vmul.f32 %v2394_v12, %v1112_v29 }
 0x3b8   :  { %v2398_v60 = vpop.eup %2397  ;;  %2417 = vpow2.f32 %v978_v43  ;;  %v1132_v36 = vmul.f32 %v3111_v18, %v1116_v1 }
 0x3b9   :  { %v3120_v58 = vpop.eup %2399  ;;  %2419 = vpow2.f32 %v982_v42  ;;  %v1131_v7 = vmul.f32 %v2398_v60, %v1115_v38 }
 0x3ba   :  { %v2402_v39 = vpop.eup %2401  ;;  %v1134_v31 = vmul.f32 %v3120_v58, %v1118_v35 }
 0x3bb   :  { %v3129_v51 = vpop.eup %2403  ;;  %v1133_v16 = vmul.f32 %v2402_v39, %v1117_v63  ;;  %v1127_v63 = vld [vmem:[#allocation4 + $0x78] sm:$0xff] }
 0x3bc   :  { %v2406_v59 = vpop.eup %2405  ;;  %v1136_v42 = vmul.f32 %v3129_v51, %v1120_v33 }
 0x3bd   :  { %v3135_v13 = vpop.eup %2407  ;;  %v1135_v47 = vmul.f32 %v2406_v59, %v1119_v50 }
 0x3be   :  { %v3141_v10 = vpop.eup %2409 }
 0x3bf   :  { %v3143_v32 = vpop.eup %2411  ;;  %v1137_v17 = vmul.f32 %v3141_v10, %v1121_v57 }
 0x3c0   :  { %v3147_v5 = vpop.eup %2413 }
 0x3c1   :  { %v3149_v28 = vpop.eup %2415 }
 0x3c2   :  { %1232 = vperm.xlu1 %2356, %v2390_v56   ;;  %v3153_v0 = vpop.eup %2417 }
 0x3c3   :  { %v3156_v37 = vpop.eup %2419 }
 0x3c6   :  { %1237 = vperm.xlu1 %2356, %v3102_v48  }
 0x3ca   :  { %1247 = vperm.xlu1 %2356, %v3111_v18   ;;  %1227 = vperm.xlu0 %2355, %v2394_v12  }
 0x3ce   :  { %1257 = vperm.xlu1 %2356, %v3120_v58   ;;  %1242 = vperm.xlu0 %2355, %v2398_v60  }
 0x3d2   :  { %1267 = vperm.xlu1 %2356, %v3129_v51   ;;  %1252 = vperm.xlu0 %2355, %v2402_v39   ;;  %v1123_v39 = vld [vmem:[#allocation4 + $0x58] sm:$0xff] }
 0x3d3   :  { %v1139_v58 = vmul.f32 %v3147_v5, %v1123_v39 }
 0x3d6   :  { %1277 = vperm.xlu1 %2356, %v3135_v13   ;;  %1262 = vperm.xlu0 %2355, %v2406_v59  }
 0x3da   :  { %1287 = vperm.xlu1 %2356, %v3143_v32   ;;  %1272 = vperm.xlu0 %2355, %v3141_v10  }
 0x3de   :  { %1297 = vperm.xlu1 %2356, %v3149_v28   ;;  %1282 = vperm.xlu0 %2355, %v3147_v5  }
 0x3e2   :  { %1292 = vperm.xlu0 %2355, %v3153_v0  }
 0x3e6   :  { %1302 = vperm.xlu0 %2355, %v3156_v37  }
 0x415   :  { %v1145_v21 = vpop.xlane.xlu1 %1144 }
 0x416   :  { %v1176_v46 = vadd.f32 %v1145_v21, %v1128_v61  ;;  %v1122_v61 = vld [vmem:[#allocation4 + $0x50] sm:$0xff] }
 0x417   :  { %v1138_v51 = vmul.f32 %v3135_v13, %v1122_v61 }
 0x418   :  { %1193 = vst.msk [vmem:[#allocation4] sm:$0xff] %vm302_vm0, %v1176_v46 }
 0x419   :  { %v1147_v8 = vpop.xlane.xlu0 %1146 }
 0x41a   :  { %v1177_v25 = vadd.f32 %v1147_v8, %v1129_v3  ;;  %v1125_v3 = vld [vmem:[#allocation4 + $0x68] sm:$0xff] }
 0x41b   :  { %v1141_v5 = vmul.f32 %v3153_v0, %v1125_v3  ;;  %v1143_v0 = vmul.f32 %v3156_v37, %v1127_v63 }
 0x41c   :  { %1194 = vst.msk [vmem:[#allocation4 + $0x8] sm:$0xff] %vm302_vm0, %v1177_v25 }
 0x41d   :  { %v1151_v20 = vpop.xlane.xlu1 %1150 }
 0x41e   :  { %v1179_v2 = vadd.f32 %v1151_v20, %v1131_v7 }
 0x41f   :  { %v1517_v14 = vld [vmem:[#allocation4] sm:$0xff] }
 0x420   :  { %1196 = vst.msk [vmem:[#allocation4 + $0x18] sm:$0xff] %vm302_vm0, %v1179_v2  ;;  %2421 = vrcp.f32 %v1517_v14  ;;  %v1124_v2 = vld [vmem:[#allocation4 + $0x60] sm:$0xff] }
 0x421   :  { %v1149_v24 = vpop.xlane.xlu0 %1148  ;;  %v1140_v13 = vmul.f32 %v3143_v32, %v1124_v2 }
 0x422   :  { %v1178_v19 = vadd.f32 %v1149_v24, %v1130_v6 }
 0x423   :  { %v1518_v54 = vld [vmem:[#allocation4 + $0x8] sm:$0xff] }
 0x424   :  { %1195 = vst.msk [vmem:[#allocation4 + $0x10] sm:$0xff] %vm302_vm0, %v1178_v19  ;;  %2423 = vrcp.f32 %v1518_v54 }
 0x425   :  { %v1155_v55 = vpop.xlane.xlu1 %1154 }
 0x426   :  { %v1181_v62 = vadd.f32 %v1155_v55, %v1133_v16 }
 0x427   :  { %v1520_v26 = vld [vmem:[#allocation4 + $0x18] sm:$0xff] }
 0x428   :  { %1198 = vst.msk [vmem:[#allocation4 + $0x28] sm:$0xff] %vm302_vm0, %v1181_v62  ;;  %2425 = vrcp.f32 %v1520_v26 }
 0x429   :  { %v1153_v44 = vpop.xlane.xlu0 %1152 }
 0x42a   :  { %v2422_v45 = vpop.eup %2421  ;;  %v1180_v56 = vadd.f32 %v1153_v44, %v1132_v36  ;;  %v1126_v36 = vld [vmem:[#allocation4 + $0x70] sm:$0xff] }
 0x42b   :  { %v1549_v30 = vmul.f32 %v2422_v45, %v1517_v14  ;;  %v1519_v34 = vld [vmem:[#allocation4 + $0x10] sm:$0xff]  ;;  %v1142_v32 = vmul.f32 %v3149_v28, %v1126_v36 }
 0x42c   :  { %1197 = vst.msk [vmem:[#allocation4 + $0x20] sm:$0xff] %vm302_vm0, %v1180_v56  ;;  %2427 = vrcp.f32 %v1519_v34 }
 0x42d   :  { %v1159_v11 = vpop.xlane.xlu1 %1158  ;;  %v1565_v48 = vsub.f32 2.0, %v1549_v30 }
 0x42e   :  { %v2424_v41 = vpop.eup %2423  ;;  %v1183_v4 = vadd.f32 %v1159_v11, %v1135_v47 }
 0x42f   :  { %v1581_v12 = vmul.f32 %v2422_v45, %v1565_v48  ;;  %v1550_v22 = vmul.f32 %v2424_v41, %v1518_v54  ;;  %v1522_v18 = vld [vmem:[#allocation4 + $0x28] sm:$0xff] }
 0x430   :  { %1200 = vst.msk [vmem:[#allocation4 + $0x38] sm:$0xff] %vm302_vm0, %v1183_v4  ;;  %2429 = vrcp.f32 %v1522_v18 }
 0x431   :  { %1615 = vperm.xlu1 %2356, %v1581_v12   ;;  %v1157_v27 = vpop.xlane.xlu0 %1156  ;;  %v1566_v60 = vsub.f32 2.0, %v1550_v22 }
 0x432   :  { %v2426_v49 = vpop.eup %2425  ;;  %v1163_v9 = vpop.xlane.xlu1 %1162  ;;  %v1182_v40 = vadd.f32 %v1157_v27, %v1134_v31 }
 0x433   :  { %v1185_v53 = vadd.f32 %v1163_v9, %v1137_v17  ;;  %v1582_v43 = vmul.f32 %v2424_v41, %v1566_v60  ;;  %v1552_v59 = vmul.f32 %v2426_v49, %v1520_v26  ;;  %v1521_v23 = vld [vmem:[#allocation4 + $0x20] sm:$0xff] }
 0x434   :  { %1199 = vst.msk [vmem:[#allocation4 + $0x30] sm:$0xff] %vm302_vm0, %v1182_v40  ;;  %2431 = vrcp.f32 %v1521_v23 }
 0x435   :  { %1202 = vst.msk [vmem:[#allocation4 + $0x48] sm:$0xff] %vm302_vm0, %v1185_v53  ;;  %1620 = vperm.xlu0 %2355, %v1582_v43   ;;  %v1161_v10 = vpop.xlane.xlu0 %1160  ;;  %v1568_v29 = vsub.f32 2.0, %v1552_v59 }
 0x436   :  { %v2428_v21 = vpop.eup %2427  ;;  %v1167_v15 = vpop.xlane.xlu1 %1166  ;;  %v1184_v46 = vadd.f32 %v1161_v10, %v1136_v42 }
 0x437   :  { %v1187_v8 = vadd.f32 %v1167_v15, %v1139_v58  ;;  %v1584_v38 = vmul.f32 %v2426_v49, %v1568_v29  ;;  %v1551_v25 = vmul.f32 %v2428_v21, %v1519_v34  ;;  %v1524_v7 = vld [vmem:[#allocation4 + $0x38] sm:$0xff] }
 0x438   :  { %1201 = vst.msk [vmem:[#allocation4 + $0x40] sm:$0xff] %vm302_vm0, %v1184_v46  ;;  %2433 = vrcp.f32 %v1524_v7 }
 0x439   :  { %1204 = vst.msk [vmem:[#allocation4 + $0x58] sm:$0xff] %vm302_vm0, %v1187_v8  ;;  %1630 = vperm.xlu0 %2355, %v1584_v38   ;;  %v1165_v20 = vpop.xlane.xlu0 %1164  ;;  %v1567_v52 = vsub.f32 2.0, %v1551_v25 }
 0x43a   :  { %v2430_v14 = vpop.eup %2429  ;;  %v1171_v6 = vpop.xlane.xlu1 %1170  ;;  %v1186_v24 = vadd.f32 %v1165_v20, %v1138_v51 }
 0x43b   :  { %v1189_v19 = vadd.f32 %v1171_v6, %v1141_v5  ;;  %v1583_v54 = vmul.f32 %v2428_v21, %v1567_v52  ;;  %v1554_v16 = vmul.f32 %v2430_v14, %v1522_v18  ;;  %v1523_v55 = vld [vmem:[#allocation4 + $0x30] sm:$0xff] }
 0x43c   :  { %1203 = vst.msk [vmem:[#allocation4 + $0x50] sm:$0xff] %vm302_vm0, %v1186_v24  ;;  %v1526_v1 = vld [vmem:[#allocation4 + $0x48] sm:$0xff]  ;;  %2435 = vrcp.f32 %v1523_v55 }
 0x43d   :  { %1206 = vst.msk [vmem:[#allocation4 + $0x68] sm:$0xff] %vm302_vm0, %v1189_v19  ;;  %1625 = vperm.xlu1 %2356, %v1583_v54   ;;  %v1169_v62 = vpop.xlane.xlu0 %1168  ;;  %v1570_v26 = vsub.f32 2.0, %v1554_v16  ;;  %2437 = vrcp.f32 %v1526_v1 }
 0x43e   :  { %v2432_v44 = vpop.eup %2431  ;;  %v1175_v50 = vpop.xlane.xlu1 %1174  ;;  %v1188_v45 = vadd.f32 %v1169_v62, %v1140_v13 }
 0x43f   :  { %v1191_v56 = vadd.f32 %v1175_v50, %v1143_v0  ;;  %v1586_v30 = vmul.f32 %v2430_v14, %v1570_v26  ;;  %v1553_v34 = vmul.f32 %v2432_v44, %v1521_v23  ;;  %v1525_v47 = vld [vmem:[#allocation4 + $0x40] sm:$0xff] }
 0x440   :  { %1205 = vst.msk [vmem:[#allocation4 + $0x60] sm:$0xff] %vm302_vm0, %v1188_v45  ;;  %v1528_v11 = vld [vmem:[#allocation4 + $0x58] sm:$0xff]  ;;  %2439 = vrcp.f32 %v1525_v47 }
 0x441   :  { %1208 = vst.msk [vmem:[#allocation4 + $0x78] sm:$0xff] %vm302_vm0, %v1191_v56  ;;  %1640 = vperm.xlu0 %2355, %v1586_v30   ;;  %v1173_v37 = vpop.xlane.xlu0 %1172  ;;  %v1569_v48 = vsub.f32 2.0, %v1553_v34  ;;  %2441 = vrcp.f32 %v1528_v11 }
 0x442   :  { %v2434_v35 = vpop.eup %2433  ;;  %v1190_v41 = vadd.f32 %v1173_v37, %v1142_v32 }
 0x443   :  { %v1585_v4 = vmul.f32 %v2432_v44, %v1569_v48  ;;  %v1556_v57 = vmul.f32 %v2434_v35, %v1524_v7  ;;  %v1527_v12 = vld [vmem:[#allocation4 + $0x50] sm:$0xff] }
 0x444   :  { %1207 = vst.msk [vmem:[#allocation4 + $0x70] sm:$0xff] %vm302_vm0, %v1190_v41  ;;  %v1530_v22 = vld [vmem:[#allocation4 + $0x68] sm:$0xff]  ;;  %2443 = vrcp.f32 %v1527_v12 }
 0x445   :  { %1635 = vperm.xlu1 %2356, %v1585_v4   ;;  %v1572_v18 = vsub.f32 2.0, %v1556_v57  ;;  %2445 = vrcp.f32 %v1530_v22 }
 0x446   :  { %v2436_v28 = vpop.eup %2435 }
 0x447   :  { %v2438_v31 = vpop.eup %2437  ;;  %v1588_v17 = vmul.f32 %v2434_v35, %v1572_v18  ;;  %v1555_v27 = vmul.f32 %v2436_v28, %v1523_v55  ;;  %v1529_v60 = vld [vmem:[#allocation4 + $0x60] sm:$0xff] }
 0x448   :  { %v1558_v33 = vmul.f32 %v2438_v31, %v1526_v1  ;;  %v1532_v49 = vld [vmem:[#allocation4 + $0x78] sm:$0xff]  ;;  %2447 = vrcp.f32 %v1529_v60 }
 0x449   :  { %1650 = vperm.xlu0 %2355, %v1588_v17   ;;  %v1571_v9 = vsub.f32 2.0, %v1555_v27  ;;  %2449 = vrcp.f32 %v1532_v49  ;;  %v1228_v37 = vpop.permute.xlu0 %1227 }
 0x44a   :  { %v2440_v40 = vpop.eup %2439  ;;  %v1574_v39 = vsub.f32 2.0, %v1558_v33 }
 0x44b   :  { %v2442_v53 = vpop.eup %2441  ;;  %v1587_v43 = vmul.f32 %v2436_v28, %v1571_v9  ;;  %v1557_v59 = vmul.f32 %v2440_v40, %v1525_v47  ;;  %v1531_v23 = vld [vmem:[#allocation4 + $0x70] sm:$0xff]  ;;  %v1233_v47 = vpop.permute.xlu1 %1232  ;;  %v1305_v9 = vmul.f32 0.0, %v1228_v37 }
 0x44c   :  { %v1590_v42 = vmul.f32 %v2438_v31, %v1574_v39  ;;  %v1560_v58 = vmul.f32 %v2442_v53, %v1528_v11  ;;  %2451 = vrcp.f32 %v1531_v23 }
 0x44d   :  { %1645 = vperm.xlu1 %2356, %v1587_v43   ;;  %v1573_v10 = vsub.f32 2.0, %v1557_v59  ;;  %v1243_v4 = vpop.permute.xlu0 %1242  ;;  %v1306_v43 = vmul.f32 0.0, %v1233_v47 }
 0x44e   :  { %v2444_v29 = vpop.eup %2443  ;;  %1660 = vperm.xlu0 %2355, %v1590_v42   ;;  %v1576_v61 = vsub.f32 2.0, %v1560_v58  ;;  %v1308_v58 = vmul.f32 0.0, %v1243_v4 }
 0x44f   :  { %v2446_v21 = vpop.eup %2445  ;;  %v1589_v15 = vmul.f32 %v2440_v40, %v1573_v10  ;;  %v1559_v46 = vmul.f32 %v2444_v29, %v1527_v12  ;;  %v1238_v48 = vpop.permute.xlu1 %1237 }
 0x450   :  { %v1592_v3 = vmul.f32 %v2442_v53, %v1576_v61  ;;  %v1562_v8 = vmul.f32 %v2446_v21, %v1530_v22 }
 0x451   :  { %1655 = vperm.xlu1 %2356, %v1589_v15   ;;  %v1575_v38 = vsub.f32 2.0, %v1559_v46  ;;  %v1253_v12 = vpop.permute.xlu0 %1252 }
 0x452   :  { %v2448_v25 = vpop.eup %2447  ;;  %1670 = vperm.xlu0 %2355, %v1592_v3   ;;  %v1578_v7 = vsub.f32 2.0, %v1562_v8  ;;  %v1310_v8 = vmul.f32 0.0, %v1253_v12 }
 0x453   :  { %v2450_v51 = vpop.eup %2449  ;;  %v1591_v5 = vmul.f32 %v2444_v29, %v1575_v38  ;;  %v1561_v20 = vmul.f32 %v2448_v25, %v1529_v60  ;;  %v1248_v57 = vpop.permute.xlu1 %1247 }
 0x454   :  { %v1594_v52 = vmul.f32 %v2446_v21, %v1578_v7  ;;  %v1564_v2 = vmul.f32 %v2450_v51, %v1532_v49  ;;  %v1307_v21 = vmul.f32 0.0, %v1238_v48 }
 0x455   :  { %1665 = vperm.xlu1 %2356, %v1591_v5   ;;  %v1577_v14 = vsub.f32 2.0, %v1561_v20  ;;  %v1263_v18 = vpop.permute.xlu0 %1262 }
 0x456   :  { %v2452_v6 = vpop.eup %2451  ;;  %1680 = vperm.xlu0 %2355, %v1594_v52   ;;  %v1580_v24 = vsub.f32 2.0, %v1564_v2  ;;  %v1312_v2 = vmul.f32 0.0, %v1263_v18 }
 0x457   :  { %v1593_v63 = vmul.f32 %v2448_v25, %v1577_v14  ;;  %v1563_v19 = vmul.f32 %v2452_v6, %v1531_v23  ;;  %v1258_v22 = vpop.permute.xlu1 %1257 }
 0x458   :  { %v1596_v54 = vmul.f32 %v2450_v51, %v1580_v24  ;;  %v1309_v51 = vmul.f32 0.0, %v1248_v57 }
 0x459   :  { %1675 = vperm.xlu1 %2356, %v1593_v63   ;;  %v1579_v16 = vsub.f32 2.0, %v1563_v19  ;;  %v1273_v31 = vpop.permute.xlu0 %1272  ;;  %v1311_v63 = vmul.f32 0.0, %v1258_v22 }
 0x45a   :  { %1690 = vperm.xlu0 %2355, %v1596_v54   ;;  %v1314_v54 = vmul.f32 0.0, %v1273_v31 }
 0x45b   :  { %v1595_v55 = vmul.f32 %v2452_v6, %v1579_v16  ;;  %v1268_v28 = vpop.permute.xlu1 %1267 }
 0x45d   :  { %1685 = vperm.xlu1 %2356, %v1595_v55   ;;  %v1283_v27 = vpop.permute.xlu0 %1282 }
 0x45f   :  { %v2162_v13 = vpop.f32.mrb[32].mxu0  ;;  %v1278_v17 = vpop.permute.xlu1 %1277 }
 0x460   :  { %v1387_v1 = vpop.f32.mrb[33].mxu0  ;;  %v1467_v23 = vadd.f32 %v2162_v13, %v1306_v43  ;;  %v1315_v48 = vmul.f32 0.0, %v1278_v17 }
 0x461   :  { %v1293_v33 = vpop.permute.xlu0 %1292  ;;  %v1466_v40 = vadd.f32 %v1387_v1, %v1305_v9  ;;  %v1313_v1 = vmul.f32 0.0, %v1268_v28 }
 0x462   :  { %v1318_v12 = vmul.f32 0.0, %v1293_v33 }
 0x463   :  { %v3200_v60 = vpop.permute.xlu1 %1287 }
 0x464   :  { %v1317_v28 = vmul.f32 0.0, %v3200_v60 }
 0x465   :  { %v1303_v39 = vpop.permute.xlu0 %1302 }
 0x467   :  { %v3202_v49 = vpop.permute.xlu1 %1297 }
 0x468   :  { %v2165_v0 = vpop.f32.mrb[34].mxu0 }
 0x469   :  { %v1397_v62 = vpop.f32.mrb[35].mxu0  ;;  %v1469_v29 = vadd.f32 %v2165_v0, %v1308_v58 }
 0x46a   :  { %v1468_v46 = vadd.f32 %v1397_v62, %v1307_v21 }
 0x470   :  { %v2168_v26 = vpop.f32.mrb[36].mxu0 }
 0x471   :  { %v1407_v36 = vpop.f32.mrb[37].mxu0  ;;  %v1471_v25 = vadd.f32 %v2168_v26, %v1310_v8  ;;  %v1316_v26 = vmul.f32 0.0, %v1283_v27  ;;  %v1320_v27 = vmul.f32 0.0, %v1303_v39 }
 0x472   :  { %v1470_v20 = vadd.f32 %v1407_v36, %v1309_v51 }
 0x478   :  { %v2171_v44 = vpop.f32.mrb[38].mxu0 }
 0x479   :  { %v1417_v50 = vpop.f32.mrb[39].mxu0  ;;  %v1473_v6 = vadd.f32 %v2171_v44, %v1312_v2 }
 0x47a   :  { %v1472_v16 = vadd.f32 %v1417_v50, %v1311_v63 }
 0x47c   :  { %v2174_v45 = vpop.f32.mrb[40].mxu0 }
 0x47d   :  { %v3186_v56 = vpop.f32.mrb[41].mxu0  ;;  %v1475_v55 = vadd.f32 %v2174_v45, %v1314_v54 }
 0x47e   :  { %v1474_v36 = vadd.f32 %v3186_v56, %v1313_v1 }
 0x480   :  { %v3188_v30 = vpop.f32.mrb[42].mxu0 }
 0x481   :  { %v3190_v34 = vpop.f32.mrb[43].mxu0  ;;  %v1477_v37 = vadd.f32 %v3188_v30, %v1316_v26 }
 0x482   :  { %v1476_v45 = vadd.f32 %v3190_v34, %v1315_v48  ;;  %v1319_v34 = vmul.f32 0.0, %v3202_v49 }
 0x484   :  { %v3192_v32 = vpop.f32.mrb[44].mxu0 }
 0x485   :  { %v3194_v11 = vpop.f32.mrb[45].mxu0  ;;  %v1479_v22 = vadd.f32 %v3192_v32, %v1318_v12 }
 0x486   :  { %v1478_v9 = vadd.f32 %v3194_v11, %v1317_v28 }
 0x488   :  { %v3196_v35 = vpop.f32.mrb[46].mxu0 }
 0x489   :  { %v3198_v41 = vpop.f32.mrb[47].mxu0  ;;  %v1481_v17 = vadd.f32 %v3196_v35, %v1320_v27 }
 0x48a   :  { %v1480_v60 = vadd.f32 %v3198_v41, %v1319_v34 }
 0x4b0   :  { %v1616_v53 = vpop.permute.xlu1 %1615 }
 0x4b1   :  { %v1693_v59 = vmul.f32 %v1616_v53, %v1466_v40 }
 0x4b3   :  { %1709 = vst [vmem:[#allocation15] sm:$0xff] %v1693_v59 }
 0x4b4   :  { %v1621_v42 = vpop.permute.xlu0 %1620 }
 0x4b5   :  { %v1694_v10 = vmul.f32 %v1621_v42, %v1467_v23 }
 0x4b7   :  { %1710 = vst [vmem:[#allocation15 + $0x8] sm:$0xff] %v1694_v10 }
 0x4b8   :  { %v1631_v61 = vpop.permute.xlu0 %1630 }
 0x4b9   :  { %v1696_v15 = vmul.f32 %v1631_v61, %v1469_v29 }
 0x4bb   :  { %1712 = vst [vmem:[#allocation15 + $0x18] sm:$0xff] %v1696_v15 }
 0x4bc   :  { %v1626_v3 = vpop.permute.xlu1 %1625 }
 0x4bd   :  { %v1695_v38 = vmul.f32 %v1626_v3, %v1468_v46 }
 0x4bf   :  { %1711 = vst [vmem:[#allocation15 + $0x10] sm:$0xff] %v1695_v38 }
 0x4c0   :  { %v1641_v7 = vpop.permute.xlu0 %1640 }
 0x4c1   :  { %v1698_v5 = vmul.f32 %v1641_v7, %v1471_v25 }
 0x4c3   :  { %1714 = vst [vmem:[#allocation15 + $0x28] sm:$0xff] %v1698_v5 }
 0x4c4   :  { %v1636_v52 = vpop.permute.xlu1 %1635 }
 0x4c5   :  { %v1697_v14 = vmul.f32 %v1636_v52, %v1470_v20 }
 0x4c7   :  { %1713 = vst [vmem:[#allocation15 + $0x20] sm:$0xff] %v1697_v14 }
 0x4c8   :  { %v1651_v24 = vpop.permute.xlu0 %1650 }
 0x4c9   :  { %v1700_v19 = vmul.f32 %v1651_v24, %v1473_v6 }
 0x4cb   :  { %1716 = vst [vmem:[#allocation15 + $0x38] sm:$0xff] %v1700_v19 }
 0x4cc   :  { %v1646_v13 = vpop.permute.xlu1 %1645 }
 0x4cd   :  { %v1699_v0 = vmul.f32 %v1646_v13, %v1472_v16  ;;  %v1661_v62 = vpop.permute.xlu0 %1660 }
 0x4ce   :  { %v1702_v47 = vmul.f32 %v1661_v62, %v1475_v55 }
 0x4cf   :  { %1715 = vst [vmem:[#allocation15 + $0x30] sm:$0xff] %v1699_v0 }
 0x4d0   :  { %1718 = vst [vmem:[#allocation15 + $0x48] sm:$0xff] %v1702_v47  ;;  %v1656_v44 = vpop.permute.xlu1 %1655 }
 0x4d1   :  { %v1701_v4 = vmul.f32 %v1656_v44, %v1474_v36  ;;  %v1671_v57 = vpop.permute.xlu0 %1670 }
 0x4d2   :  { %v1704_v50 = vmul.f32 %v1671_v57, %v1477_v37 }
 0x4d3   :  { %1717 = vst [vmem:[#allocation15 + $0x40] sm:$0xff] %v1701_v4 }
 0x4d4   :  { %1720 = vst [vmem:[#allocation15 + $0x58] sm:$0xff] %v1704_v50  ;;  %v1666_v18 = vpop.permute.xlu1 %1665 }
 0x4d5   :  { %v1703_v56 = vmul.f32 %v1666_v18, %v1476_v45  ;;  %v1681_v31 = vpop.permute.xlu0 %1680 }
 0x4d6   :  { %v1706_v30 = vmul.f32 %v1681_v31, %v1479_v22 }
 0x4d7   :  { %1719 = vst [vmem:[#allocation15 + $0x50] sm:$0xff] %v1703_v56 }
 0x4d8   :  { %1722 = vst [vmem:[#allocation15 + $0x68] sm:$0xff] %v1706_v30  ;;  %v1676_v33 = vpop.permute.xlu1 %1675 }
 0x4d9   :  { %v1705_v40 = vmul.f32 %v1676_v33, %v1478_v9  ;;  %v1691_v53 = vpop.permute.xlu0 %1690 }
 0x4da   :  { %v1708_v32 = vmul.f32 %v1691_v53, %v1481_v17 }
 0x4db   :  { %1721 = vst [vmem:[#allocation15 + $0x60] sm:$0xff] %v1705_v40 }
 0x4dc   :  { %1724 = vst [vmem:[#allocation15 + $0x78] sm:$0xff] %v1708_v32  ;;  %v1686_v39 = vpop.permute.xlu1 %1685 }
 0x4dd   :  { %v1707_v43 = vmul.f32 %v1686_v39, %v1480_v60 }
 0x4df   :  { %1723 = vst [vmem:[#allocation15 + $0x70] sm:$0xff] %v1707_v43 }
 0x4e0   :  { %2574 = shalt.err (!%p2571_p2)
}
 0x4e1   :  { %s2575_s7 = scalar_lea.hbm %s3233_s5, 2048 }
 0x4e2   :  { %p2576_p3 = scmp.ne.s32.totalorder %s3233_s5, %s2575_s7  ;;  %p2579_p4 = scmp.lt.u32.totalorder %s2575_s7, %s3233_s5 }
 0x4e4   :  { %p2581_p5 = pnand %p2579_p4, %p2576_p3 }
 0x4e6   :  { %2584 = shalt.err (!%p2581_p5)
}
 0x4e7   :  { %1736 = dma.vmem_to_hbm [thread:$0]  %s1731_s28, 2048, %s3233_s5, [#allocation8], %s2595_s30, %s2595_s30, %s2596_s6  }
 0x4e8   :  { %2591 = dma.done.wait [#allocation8], 2048  }
 0x4e9   :  { %2592 = vsyncadd [#allocation8], 4294965248 }
 0x4ea   :  { %1740 = vsyncpa [#allocation7], 1 }
 0x4eb   :  { %1741 = vsyncpa [#allocation10], 1 }
 0x4ec   :  { %1742 = vsyncpa [#allocation13], 1 }
 0x4ed   :  { %1743 = vsyncpa [#allocation8], 1 }

</bundles_post_ra>
